<compile_context>
chip_gen: v5e
topology: v5e:2x2
jax: 0.10.0
libtpu: 0.0.40
codegen_flags: <defaults>
</compile_context>

<pallas_src>
import functools

import jax
import jax.numpy as jnp
from jax.experimental import pallas as pl
from jax.experimental.pallas import tpu as pltpu


def _round_up(x, m):
    return ((x + m - 1) // m) * m


def _apply_activation(x, activation):
    if activation == "relu":
        return jnp.maximum(x, 0.0)
    if activation == "tanh":
        return jnp.tanh(x)
    if activation == "sigmoid":
        return jax.nn.sigmoid(x)
    if activation == "softplus":
        return jax.nn.softplus(x)
    return x  # activation is None -> identity


def _integrator_kernel(activation, x_ref, hx_ref, wx_ref, wh_ref,
                       lnx_w_ref, lnx_b_ref, lnh_w_ref, lnh_b_ref, out_ref):
    eps = 1e-5
    x = x_ref[...].astype(jnp.float32)        # (TB, N)
    hx = hx_ref[...].astype(jnp.float32)      # (TB, N)
    N = x.shape[-1]
    mm_dtype = wh_ref.dtype                   # bf16 (or f32) matmul operand dtype

    # ---- h2h: Linear(N -> 2N, bias=False) + LayerNorm(2N) ----
    z = jnp.dot(hx.astype(mm_dtype), wh_ref[...],
                preferred_element_type=jnp.float32)                    # (TB, 2N) f32
    mu = jnp.mean(z, axis=-1, keepdims=True)
    ms = jnp.mean(z * z, axis=-1, keepdims=True)
    var = jnp.maximum(ms - mu * mu, 0.0)                               # one-pass variance
    h2h = (z - mu) * jax.lax.rsqrt(var + eps) * lnh_w_ref[...] + lnh_b_ref[...]

    h_i = h2h[:, :N]   # chunk(2, dim=1) -> first half  (N % 128 == 0 => lane-aligned)
    h_g = h2h[:, N:]   # second half

    # ---- activation(x + h_i) ----
    xa = _apply_activation(x + h_i, activation)                        # f32

    # ---- x2h: Linear(N -> N, bias=False) + LayerNorm(N) ----
    z2 = jnp.dot(xa.astype(mm_dtype), wx_ref[...],
                 preferred_element_type=jnp.float32)                   # (TB, N) f32
    mu2 = jnp.mean(z2, axis=-1, keepdims=True)
    ms2 = jnp.mean(z2 * z2, axis=-1, keepdims=True)
    var2 = jnp.maximum(ms2 - mu2 * mu2, 0.0)
    x2h = (z2 - mu2) * jax.lax.rsqrt(var2 + eps) * lnx_w_ref[...] + lnx_b_ref[...]

    # ---- gate and integrate ----
    g = jax.nn.sigmoid(x2h + h_g)
    h = (1.0 - g) * hx + g * xa
    out_ref[...] = h.astype(out_ref.dtype)


def _vmem_cap_bytes():
    """Generation-aware VMEM ceiling with ~20% headroom for Mosaic internal scratch."""
    try:
        physical = int(pltpu.get_tpu_info().vmem_capacity_bytes)
    except Exception:
        physical = 128 << 20
    return max(int(physical * 0.80), 16 << 20)


def _choose_tile_b(B):
    """Largest multiple-of-8 divisor of the 8-aligned batch, <= min(256, ceil(B/2)).

    - avoids wrapper-side jnp.pad (beyond the <=7-row alignment tail),
    - yields >= 2 grid steps whenever the batch allows, so the "parallel" batch axis
      can shard across both v7x TensorCores,
    - caps at 256 rows (fills the 2x256x256 MXU on v6e/v7x; >=128 fills v5e's 4x128x128).
    """
    pad_b8 = _round_up(B, 8)
    if pad_b8 <= 8:
        return 8
    target = min(256, _round_up(pl.cdiv(pad_b8, 2), 8))
    best, t = 8, 8
    while t <= target:
        if pad_b8 % t == 0:
            best = t
        t += 8
    return best


def integrator_forward(x, hx, params, activation, tile_b=None):
    B, N = x.shape
    assert N % 128 == 0, "N must be a multiple of 128 (lane-aligned chunk split)"

    wx_t = params["x2h_w_t"]     # (N, N)   pre-transposed (in, out), bf16
    wh_t = params["h2h_w_t"]     # (N, 2N)  pre-transposed (in, out), bf16
    lnx_w, lnx_b = params["x2h_ln_w"], params["x2h_ln_b"]   # (1, N)  f32
    lnh_w, lnh_b = params["h2h_ln_w"], params["h2h_ln_b"]   # (1, 2N) f32

    if tile_b is None:
        tile_b = _choose_tile_b(B)
    tile_b = max(8, _round_up(tile_b, 8))

    pad_B = _round_up(B, tile_b)
    x_p, hx_p = x, hx
    if pad_B != B:
        pad = pad_B - B
        x_p = jnp.pad(x, ((0, pad), (0, 0)))
        hx_p = jnp.pad(hx, ((0, pad), (0, 0)))
    grid = (pl.cdiv(pad_B, tile_b),)

    kernel = functools.partial(_integrator_kernel, activation)
    w_itemsize = jnp.dtype(wx_t.dtype).itemsize
    act_itemsize = jnp.dtype(x.dtype).itemsize
    vmem_cap = _vmem_cap_bytes()

    def run(single_buffer_weights):
        const_kwargs = {}
        if single_buffer_weights:
            # Constant index_map => DMA'd once; a second buffer is pure VMEM waste.
            const_kwargs["pipeline_mode"] = pl.Buffered(1)

        def batch_spec():
            return pl.BlockSpec((tile_b, N), lambda i: (i, 0))

        def const_spec(shape):
            return pl.BlockSpec(shape, lambda i: (0,) * len(shape), **const_kwargs)

        # --- VMEM budget ---
        w_buffers = 1 if single_buffer_weights else 2
        w_bytes = (N * N + N * 2 * N) * w_itemsize              # Wx + Wh
        ln_bytes = (2 * N + 2 * 2 * N) * 4                       # LN weight/bias rows
        act_bytes = 3 * tile_b * N * act_itemsize                 # x, hx, out tiles
        # Live f32 intermediates: x, hx, xa, z2, x2h, g, h (7*TB*N) + z, h2h (2*TB*2N)
        # + bf16 matmul operand copies; ~14*TB*N f32 with margin.
        f32_work = 14 * tile_b * N * 4
        needed = (w_buffers * (w_bytes + ln_bytes)
                  + 2 * act_bytes          # double-buffered pipelined activation tiles
                  + f32_work
                  + (4 << 20))             # slack for Mosaic internal scratch
        vmem_limit = int(min(max(needed, 16 << 20), vmem_cap))

        return pl.pallas_call(
            kernel,
            out_shape=jax.ShapeDtypeStruct((pad_B, N), x.dtype),
            grid=grid,
            in_specs=[
                batch_spec(),                 # x
                batch_spec(),                 # hx
                const_spec((N, N)),           # x2h weight (in, out) - VMEM resident
                const_spec((N, 2 * N)),       # h2h weight (in, out) - VMEM resident
                const_spec((1, N)),           # x2h LayerNorm weight
                const_spec((1, N)),           # x2h LayerNorm bias
                const_spec((1, 2 * N)),       # h2h LayerNorm weight
                const_spec((1, 2 * N)),       # h2h LayerNorm bias
            ],
            out_specs=batch_spec(),
            compiler_params=pltpu.CompilerParams(
                dimension_semantics=("parallel",),     # megacore sharding on v7x
                vmem_limit_bytes=vmem_limit,
            ),
        )(x_p, hx_p, wx_t, wh_t, lnx_w, lnx_b, lnh_w, lnh_b)

    try:
        out = run(single_buffer_weights=True)
    except Exception:
        # Fallback in case this JAX build rejects single-buffered pipeline_mode.
        out = run(single_buffer_weights=False)
    return out[:B]


def init_params(key, out_neurons, Tmax, weight_dtype=jnp.bfloat16):
    """Matches PyTorch Integrator.__init__ + _reset_parameters().

    Linear weights are sampled in PyTorch's (out_features, in_features) layout, then stored
    transposed (in, out) and cast to `weight_dtype` ONCE here: the per-call path has no
    transpose and streams half the weight bytes.
    """
    N = out_neurons
    k1, k2, k3 = jax.random.split(key, 3)
    bound = 1.0 / jnp.sqrt(N)
    x2h_w = jax.random.uniform(k1, (N, N), jnp.float32, -bound, bound)       # (out, in)
    h2h_w = jax.random.uniform(k2, (2 * N, N), jnp.float32, -bound, bound)   # (out, in)
    # _reset_parameters(): LN weights = 0.1, x2h LN bias = -log(U(1, Tmax-1)), h2h LN bias = 0
    x2h_ln_b = -jnp.log(jax.random.uniform(k3, (N,), jnp.float32, 1.0, float(Tmax - 1)))
    return {
        "x2h_w_t": x2h_w.T.astype(weight_dtype),          # (N, N)   (in, out)
        "h2h_w_t": h2h_w.T.astype(weight_dtype),          # (N, 2N)  (in, out)
        "x2h_ln_w": jnp.full((1, N), 0.1, jnp.float32),
        "x2h_ln_b": x2h_ln_b.reshape(1, N),
        "h2h_ln_w": jnp.full((1, 2 * N), 0.1, jnp.float32),
        "h2h_ln_b": jnp.zeros((1, 2 * N), jnp.float32),
    }


def _reference_forward(x, hx, params, activation):
    """Pure-JAX reference matching the PyTorch forward (same bf16 weight rounding)."""
    eps = 1e-5
    N = x.shape[-1]
    wdt = params["h2h_w_t"].dtype
    wh = params["h2h_w_t"].astype(jnp.float32)   # (N, 2N)
    wx = params["x2h_w_t"].astype(jnp.float32)   # (N, N)

    z = hx.astype(wdt).astype(jnp.float32) @ wh
    zn = (z - z.mean(-1, keepdims=True)) * jax.lax.rsqrt(z.var(-1, keepdims=True) + eps)
    h2h = zn * params["h2h_ln_w"] + params["h2h_ln_b"]
    h_i, h_g = h2h[:, :N], h2h[:, N:]

    xa = _apply_activation(x + h_i, activation)

    z2 = xa.astype(wdt).astype(jnp.float32) @ wx
    z2n = (z2 - z2.mean(-1, keepdims=True)) * jax.lax.rsqrt(z2.var(-1, keepdims=True) + eps)
    x2h = z2n * params["x2h_ln_w"] + params["x2h_ln_b"]

    g = jax.nn.sigmoid(x2h + h_g)
    return (1.0 - g) * hx + g * xa


if __name__ == "__main__":
    B, N, Tmax = 16, 128, 10
    activation = "relu"

    key = jax.random.PRNGKey(0)
    kx, kh, kp = jax.random.split(key, 3)
    x = jax.random.normal(kx, (B, N), jnp.float32)
    hx = jax.random.normal(kh, (B, N), jnp.float32)
    params = init_params(kp, N, Tmax, weight_dtype=jnp.bfloat16)

    # Default tile_b picks 8 here -> a 2-step batch grid with weights resident across steps.
    out = jax.block_until_ready(integrator_forward(x, hx, params, activation))

    ref = _reference_forward(x, hx, params, activation)
    assert out.shape == (B, N)
    assert jnp.allclose(out, ref, atol=2e-3, rtol=2e-3), float(jnp.max(jnp.abs(out - ref)))

    print("KERNEL_OK")
</pallas_src>

<mosaic_0001>
module attributes {stable_mosaic.version = 11 : i64} {
  func.func @_integrator_kernel(%arg0: i32, %arg1: memref<8x128xf32, #tpu.memory_space<vmem>>, %arg2: memref<8x128xf32, #tpu.memory_space<vmem>>, %arg3: memref<128x128xbf16, #tpu.memory_space<vmem>>, %arg4: memref<128x256xbf16, #tpu.memory_space<vmem>>, %arg5: memref<1x128xf32, #tpu.memory_space<vmem>>, %arg6: memref<1x128xf32, #tpu.memory_space<vmem>>, %arg7: memref<1x256xf32, #tpu.memory_space<vmem>>, %arg8: memref<1x256xf32, #tpu.memory_space<vmem>>, %arg9: memref<8x128xf32, #tpu.memory_space<vmem>>) attributes {dimension_semantics = [#tpu.dimension_semantics<parallel>], iteration_bounds = array<i64: 2>, scalar_prefetch = 0 : i64, scratch_operands = 0 : i64, tpu.core_type = #tpu.core_type<tc>, window_params = [{transform_indices = @transform_0, window_bounds = array<i64: 8, 128>}, {transform_indices = @transform_1, window_bounds = array<i64: 8, 128>}, {pipeline_mode = #tpu.pipeline_mode<synchronous>, transform_indices = @transform_2, window_bounds = array<i64: 128, 128>}, {pipeline_mode = #tpu.pipeline_mode<synchronous>, transform_indices = @transform_3, window_bounds = array<i64: 128, 256>}, {pipeline_mode = #tpu.pipeline_mode<synchronous>, transform_indices = @transform_4, window_bounds = array<i64: 1, 128>}, {pipeline_mode = #tpu.pipeline_mode<synchronous>, transform_indices = @transform_5, window_bounds = array<i64: 1, 128>}, {pipeline_mode = #tpu.pipeline_mode<synchronous>, transform_indices = @transform_6, window_bounds = array<i64: 1, 256>}, {pipeline_mode = #tpu.pipeline_mode<synchronous>, transform_indices = @transform_7, window_bounds = array<i64: 1, 256>}, {transform_indices = @transform_8, window_bounds = array<i64: 8, 128>}]} {
    %c0 = arith.constant 0 : index
    %c0_0 = arith.constant 0 : index
    %0 = vector.load %arg1[%c0, %c0_0] : memref<8x128xf32, #tpu.memory_space<vmem>>, vector<8x128xf32>
    %c0_1 = arith.constant 0 : index
    %c0_2 = arith.constant 0 : index
    %1 = vector.load %arg2[%c0_1, %c0_2] : memref<8x128xf32, #tpu.memory_space<vmem>>, vector<8x128xf32>
    %2 = arith.truncf %1 : vector<8x128xf32> to vector<8x128xbf16>
    %c0_3 = arith.constant 0 : index
    %c0_4 = arith.constant 0 : index
    %3 = vector.load %arg4[%c0_3, %c0_4] : memref<128x256xbf16, #tpu.memory_space<vmem>>, vector<128x256xbf16>
    %cst = arith.constant dense<0.000000e+00> : vector<8x256xf32>
    %4 = tpu.matmul %2, %3, %cst {dimension_numbers = #tpu.dot_dimension_numbers<[1], [0], [0], [1], [0, 0, 1, 1], [], []>} : vector<8x128xbf16>, vector<128x256xbf16>, vector<8x256xf32> -> vector<8x256xf32>
    %cst_5 = arith.constant dense<0.000000e+00> : vector<8xf32>
    %5 = vector.multi_reduction <add>, %4, %cst_5 [1] : vector<8x256xf32> to vector<8xf32>
    %6 = vector.shape_cast %5 : vector<8xf32> to vector<8x1xf32>
    %cst_6 = arith.constant 2.560000e+02 : f32
    %7 = vector.broadcast %cst_6 : f32 to vector<8x1xf32>
    %8 = arith.divf %6, %7 : vector<8x1xf32>
    %9 = arith.mulf %4, %4 : vector<8x256xf32>
    %cst_7 = arith.constant dense<0.000000e+00> : vector<8xf32>
    %10 = vector.multi_reduction <add>, %9, %cst_7 [1] : vector<8x256xf32> to vector<8xf32>
    %11 = vector.shape_cast %10 : vector<8xf32> to vector<8x1xf32>
    %cst_8 = arith.constant 2.560000e+02 : f32
    %12 = vector.broadcast %cst_8 : f32 to vector<8x1xf32>
    %13 = arith.divf %11, %12 : vector<8x1xf32>
    %14 = arith.mulf %8, %8 : vector<8x1xf32>
    %15 = arith.subf %13, %14 : vector<8x1xf32>
    %cst_9 = arith.constant 0.000000e+00 : f32
    %16 = vector.broadcast %cst_9 : f32 to vector<8x1xf32>
    %17 = arith.maximumf %15, %16 : vector<8x1xf32>
    %18 = vector.broadcast %8 : vector<8x1xf32> to vector<8x256xf32>
    %19 = arith.subf %4, %18 : vector<8x256xf32>
    %cst_10 = arith.constant 9.99999974E-6 : f32
    %20 = vector.broadcast %cst_10 : f32 to vector<8x1xf32>
    %21 = arith.addf %17, %20 : vector<8x1xf32>
    %22 = math.rsqrt %21 : vector<8x1xf32>
    %23 = vector.broadcast %22 : vector<8x1xf32> to vector<8x256xf32>
    %24 = arith.mulf %19, %23 : vector<8x256xf32>
    %c0_11 = arith.constant 0 : index
    %c0_12 = arith.constant 0 : index
    %25 = vector.load %arg7[%c0_11, %c0_12] : memref<1x256xf32, #tpu.memory_space<vmem>>, vector<1x256xf32>
    %26 = vector.broadcast %25 : vector<1x256xf32> to vector<8x256xf32>
    %27 = arith.mulf %24, %26 : vector<8x256xf32>
    %c0_13 = arith.constant 0 : index
    %c0_14 = arith.constant 0 : index
    %28 = vector.load %arg8[%c0_13, %c0_14] : memref<1x256xf32, #tpu.memory_space<vmem>>, vector<1x256xf32>
    %29 = vector.broadcast %28 : vector<1x256xf32> to vector<8x256xf32>
    %30 = arith.addf %27, %29 : vector<8x256xf32>
    %31 = vector.extract_strided_slice %30 {offsets = [0, 0], sizes = [8, 128], strides = [1, 1]} : vector<8x256xf32> to vector<8x128xf32>
    %32 = vector.extract_strided_slice %30 {offsets = [0, 128], sizes = [8, 128], strides = [1, 1]} : vector<8x256xf32> to vector<8x128xf32>
    %33 = arith.addf %0, %31 : vector<8x128xf32>
    %cst_15 = arith.constant 0.000000e+00 : f32
    %34 = vector.broadcast %cst_15 : f32 to vector<8x128xf32>
    %35 = arith.maximumf %33, %34 : vector<8x128xf32>
    %36 = arith.truncf %35 : vector<8x128xf32> to vector<8x128xbf16>
    %c0_16 = arith.constant 0 : index
    %c0_17 = arith.constant 0 : index
    %37 = vector.load %arg3[%c0_16, %c0_17] : memref<128x128xbf16, #tpu.memory_space<vmem>>, vector<128x128xbf16>
    %cst_18 = arith.constant dense<0.000000e+00> : vector<8x128xf32>
    %38 = tpu.matmul %36, %37, %cst_18 {dimension_numbers = #tpu.dot_dimension_numbers<[1], [0], [0], [1], [0, 0, 1, 1], [], []>} : vector<8x128xbf16>, vector<128x128xbf16>, vector<8x128xf32> -> vector<8x128xf32>
    %cst_19 = arith.constant dense<0.000000e+00> : vector<8xf32>
    %39 = vector.multi_reduction <add>, %38, %cst_19 [1] : vector<8x128xf32> to vector<8xf32>
    %40 = vector.shape_cast %39 : vector<8xf32> to vector<8x1xf32>
    %cst_20 = arith.constant 1.280000e+02 : f32
    %41 = vector.broadcast %cst_20 : f32 to vector<8x1xf32>
    %42 = arith.divf %40, %41 : vector<8x1xf32>
    %43 = arith.mulf %38, %38 : vector<8x128xf32>
    %cst_21 = arith.constant dense<0.000000e+00> : vector<8xf32>
    %44 = vector.multi_reduction <add>, %43, %cst_21 [1] : vector<8x128xf32> to vector<8xf32>
    %45 = vector.shape_cast %44 : vector<8xf32> to vector<8x1xf32>
    %cst_22 = arith.constant 1.280000e+02 : f32
    %46 = vector.broadcast %cst_22 : f32 to vector<8x1xf32>
    %47 = arith.divf %45, %46 : vector<8x1xf32>
    %48 = arith.mulf %42, %42 : vector<8x1xf32>
    %49 = arith.subf %47, %48 : vector<8x1xf32>
    %cst_23 = arith.constant 0.000000e+00 : f32
    %50 = vector.broadcast %cst_23 : f32 to vector<8x1xf32>
    %51 = arith.maximumf %49, %50 : vector<8x1xf32>
    %52 = vector.broadcast %42 : vector<8x1xf32> to vector<8x128xf32>
    %53 = arith.subf %38, %52 : vector<8x128xf32>
    %cst_24 = arith.constant 9.99999974E-6 : f32
    %54 = vector.broadcast %cst_24 : f32 to vector<8x1xf32>
    %55 = arith.addf %51, %54 : vector<8x1xf32>
    %56 = math.rsqrt %55 : vector<8x1xf32>
    %57 = vector.broadcast %56 : vector<8x1xf32> to vector<8x128xf32>
    %58 = arith.mulf %53, %57 : vector<8x128xf32>
    %c0_25 = arith.constant 0 : index
    %c0_26 = arith.constant 0 : index
    %59 = vector.load %arg5[%c0_25, %c0_26] : memref<1x128xf32, #tpu.memory_space<vmem>>, vector<1x128xf32>
    %60 = vector.broadcast %59 : vector<1x128xf32> to vector<8x128xf32>
    %61 = arith.mulf %58, %60 : vector<8x128xf32>
    %c0_27 = arith.constant 0 : index
    %c0_28 = arith.constant 0 : index
    %62 = vector.load %arg6[%c0_27, %c0_28] : memref<1x128xf32, #tpu.memory_space<vmem>>, vector<1x128xf32>
    %63 = vector.broadcast %62 : vector<1x128xf32> to vector<8x128xf32>
    %64 = arith.addf %61, %63 : vector<8x128xf32>
    %65 = arith.addf %64, %32 : vector<8x128xf32>
    %66 = arith.negf %65 : vector<8x128xf32>
    %67 = math.exp %66 : vector<8x128xf32>
    %cst_29 = arith.constant 1.000000e+00 : f32
    %68 = vector.broadcast %cst_29 : f32 to vector<8x128xf32>
    %69 = arith.addf %68, %67 : vector<8x128xf32>
    %70 = arith.divf %68, %69 : vector<8x128xf32>
    %cst_30 = arith.constant 1.000000e+00 : f32
    %71 = vector.broadcast %cst_30 : f32 to vector<8x128xf32>
    %72 = arith.subf %71, %70 : vector<8x128xf32>
    %73 = arith.mulf %72, %1 : vector<8x128xf32>
    %74 = arith.mulf %70, %35 : vector<8x128xf32>
    %75 = arith.addf %73, %74 : vector<8x128xf32>
    %c0_31 = arith.constant 0 : index
    %c0_32 = arith.constant 0 : index
    %76 = vector.load %arg9[%c0_31, %c0_32] : memref<8x128xf32, #tpu.memory_space<vmem>>, vector<8x128xf32>
    tpu.vector_store %arg9[%c0_31, %c0_32], %75 {strides = array<i32>} : memref<8x128xf32, #tpu.memory_space<vmem>>, vector<8x128xf32>,
    return
  }
  func.func @transform_0(%arg0: i32) -> (i32, i32) {
    %c0_i32 = arith.constant 0 : i32
    %c0_i32_0 = arith.constant 0 : i32
    return %arg0, %c0_i32 : i32, i32
  }
  func.func @transform_1(%arg0: i32) -> (i32, i32) {
    %c0_i32 = arith.constant 0 : i32
    %c0_i32_0 = arith.constant 0 : i32
    return %arg0, %c0_i32 : i32, i32
  }
  func.func @transform_2(%arg0: i32) -> (i32, i32) {
    %c0_i32 = arith.constant 0 : i32
    %c0_i32_0 = arith.constant 0 : i32
    %c0_i32_1 = arith.constant 0 : i32
    return %c0_i32, %c0_i32_0 : i32, i32
  }
  func.func @transform_3(%arg0: i32) -> (i32, i32) {
    %c0_i32 = arith.constant 0 : i32
    %c0_i32_0 = arith.constant 0 : i32
    %c0_i32_1 = arith.constant 0 : i32
    return %c0_i32, %c0_i32_0 : i32, i32
  }
  func.func @transform_4(%arg0: i32) -> (i32, i32) {
    %c0_i32 = arith.constant 0 : i32
    %c0_i32_0 = arith.constant 0 : i32
    %c0_i32_1 = arith.constant 0 : i32
    return %c0_i32, %c0_i32_0 : i32, i32
  }
  func.func @transform_5(%arg0: i32) -> (i32, i32) {
    %c0_i32 = arith.constant 0 : i32
    %c0_i32_0 = arith.constant 0 : i32
    %c0_i32_1 = arith.constant 0 : i32
    return %c0_i32, %c0_i32_0 : i32, i32
  }
  func.func @transform_6(%arg0: i32) -> (i32, i32) {
    %c0_i32 = arith.constant 0 : i32
    %c0_i32_0 = arith.constant 0 : i32
    %c0_i32_1 = arith.constant 0 : i32
    return %c0_i32, %c0_i32_0 : i32, i32
  }
  func.func @transform_7(%arg0: i32) -> (i32, i32) {
    %c0_i32 = arith.constant 0 : i32
    %c0_i32_0 = arith.constant 0 : i32
    %c0_i32_1 = arith.constant 0 : i32
    return %c0_i32, %c0_i32_0 : i32, i32
  }
  func.func @transform_8(%arg0: i32) -> (i32, i32) {
    %c0_i32 = arith.constant 0 : i32
    %c0_i32_0 = arith.constant 0 : i32
    return %arg0, %c0_i32 : i32, i32
  }
}

module attributes {stable_mosaic.version = 11 : i64} {
  func.func @_integrator_kernel(%arg0: i32, %arg1: memref<8x128xf32, #tpu.memory_space<vmem>>, %arg2: memref<8x128xf32, #tpu.memory_space<vmem>>, %arg3: memref<128x128xbf16, #tpu.memory_space<vmem>>, %arg4: memref<128x256xbf16, #tpu.memory_space<vmem>>, %arg5: memref<1x128xf32, #tpu.memory_space<vmem>>, %arg6: memref<1x128xf32, #tpu.memory_space<vmem>>, %arg7: memref<1x256xf32, #tpu.memory_space<vmem>>, %arg8: memref<1x256xf32, #tpu.memory_space<vmem>>, %arg9: memref<8x128xf32, #tpu.memory_space<vmem>>) attributes {dimension_semantics = [#tpu.dimension_semantics<parallel>], iteration_bounds = array<i64: 2>, scalar_prefetch = 0 : i64, scratch_operands = 0 : i64, tpu.core_type = #tpu.core_type<tc>, window_params = [{transform_indices = @transform_0, window_bounds = array<i64: 8, 128>}, {transform_indices = @transform_1, window_bounds = array<i64: 8, 128>}, {pipeline_mode = #tpu.pipeline_mode<synchronous>, transform_indices = @transform_2, window_bounds = array<i64: 128, 128>}, {pipeline_mode = #tpu.pipeline_mode<synchronous>, transform_indices = @transform_3, window_bounds = array<i64: 128, 256>}, {pipeline_mode = #tpu.pipeline_mode<synchronous>, transform_indices = @transform_4, window_bounds = array<i64: 1, 128>}, {pipeline_mode = #tpu.pipeline_mode<synchronous>, transform_indices = @transform_5, window_bounds = array<i64: 1, 128>}, {pipeline_mode = #tpu.pipeline_mode<synchronous>, transform_indices = @transform_6, window_bounds = array<i64: 1, 256>}, {pipeline_mode = #tpu.pipeline_mode<synchronous>, transform_indices = @transform_7, window_bounds = array<i64: 1, 256>}, {transform_indices = @transform_8, window_bounds = array<i64: 8, 128>}]} {
    %c0 = arith.constant 0 : index
    %c0_0 = arith.constant 0 : index
    %0 = vector.load %arg1[%c0, %c0_0] : memref<8x128xf32, #tpu.memory_space<vmem>>, vector<8x128xf32>
    %c0_1 = arith.constant 0 : index
    %c0_2 = arith.constant 0 : index
    %1 = vector.load %arg2[%c0_1, %c0_2] : memref<8x128xf32, #tpu.memory_space<vmem>>, vector<8x128xf32>
    %2 = arith.truncf %1 : vector<8x128xf32> to vector<8x128xbf16>
    %c0_3 = arith.constant 0 : index
    %c0_4 = arith.constant 0 : index
    %3 = vector.load %arg4[%c0_3, %c0_4] : memref<128x256xbf16, #tpu.memory_space<vmem>>, vector<128x256xbf16>
    %cst = arith.constant dense<0.000000e+00> : vector<8x256xf32>
    %4 = tpu.matmul %2, %3, %cst {dimension_numbers = #tpu.dot_dimension_numbers<[1], [0], [0], [1], [0, 0, 1, 1], [], []>} : vector<8x128xbf16>, vector<128x256xbf16>, vector<8x256xf32> -> vector<8x256xf32>
    %cst_5 = arith.constant dense<0.000000e+00> : vector<8xf32>
    %5 = vector.multi_reduction <add>, %4, %cst_5 [1] : vector<8x256xf32> to vector<8xf32>
    %6 = vector.shape_cast %5 : vector<8xf32> to vector<8x1xf32>
    %cst_6 = arith.constant 2.560000e+02 : f32
    %7 = vector.broadcast %cst_6 : f32 to vector<8x1xf32>
    %8 = arith.divf %6, %7 : vector<8x1xf32>
    %9 = arith.mulf %4, %4 : vector<8x256xf32>
    %cst_7 = arith.constant dense<0.000000e+00> : vector<8xf32>
    %10 = vector.multi_reduction <add>, %9, %cst_7 [1] : vector<8x256xf32> to vector<8xf32>
    %11 = vector.shape_cast %10 : vector<8xf32> to vector<8x1xf32>
    %cst_8 = arith.constant 2.560000e+02 : f32
    %12 = vector.broadcast %cst_8 : f32 to vector<8x1xf32>
    %13 = arith.divf %11, %12 : vector<8x1xf32>
    %14 = arith.mulf %8, %8 : vector<8x1xf32>
    %15 = arith.subf %13, %14 : vector<8x1xf32>
    %cst_9 = arith.constant 0.000000e+00 : f32
    %16 = vector.broadcast %cst_9 : f32 to vector<8x1xf32>
    %17 = arith.maximumf %15, %16 : vector<8x1xf32>
    %18 = vector.broadcast %8 : vector<8x1xf32> to vector<8x256xf32>
    %19 = arith.subf %4, %18 : vector<8x256xf32>
    %cst_10 = arith.constant 9.99999974E-6 : f32
    %20 = vector.broadcast %cst_10 : f32 to vector<8x1xf32>
    %21 = arith.addf %17, %20 : vector<8x1xf32>
    %22 = math.rsqrt %21 : vector<8x1xf32>
    %23 = vector.broadcast %22 : vector<8x1xf32> to vector<8x256xf32>
    %24 = arith.mulf %19, %23 : vector<8x256xf32>
    %c0_11 = arith.constant 0 : index
    %c0_12 = arith.constant 0 : index
    %25 = vector.load %arg7[%c0_11, %c0_12] : memref<1x256xf32, #tpu.memory_space<vmem>>, vector<1x256xf32>
    %26 = vector.broadcast %25 : vector<1x256xf32> to vector<8x256xf32>
    %27 = arith.mulf %24, %26 : vector<8x256xf32>
    %c0_13 = arith.constant 0 : index
    %c0_14 = arith.constant 0 : index
    %28 = vector.load %arg8[%c0_13, %c0_14] : memref<1x256xf32, #tpu.memory_space<vmem>>, vector<1x256xf32>
    %29 = vector.broadcast %28 : vector<1x256xf32> to vector<8x256xf32>
    %30 = arith.addf %27, %29 : vector<8x256xf32>
    %31 = vector.extract_strided_slice %30 {offsets = [0, 0], sizes = [8, 128], strides = [1, 1]} : vector<8x256xf32> to vector<8x128xf32>
    %32 = vector.extract_strided_slice %30 {offsets = [0, 128], sizes = [8, 128], strides = [1, 1]} : vector<8x256xf32> to vector<8x128xf32>
    %33 = arith.addf %0, %31 : vector<8x128xf32>
    %cst_15 = arith.constant 0.000000e+00 : f32
    %34 = vector.broadcast %cst_15 : f32 to vector<8x128xf32>
    %35 = arith.maximumf %33, %34 : vector<8x128xf32>
    %36 = arith.truncf %35 : vector<8x128xf32> to vector<8x128xbf16>
    %c0_16 = arith.constant 0 : index
    %c0_17 = arith.constant 0 : index
    %37 = vector.load %arg3[%c0_16, %c0_17] : memref<128x128xbf16, #tpu.memory_space<vmem>>, vector<128x128xbf16>
    %cst_18 = arith.constant dense<0.000000e+00> : vector<8x128xf32>
    %38 = tpu.matmul %36, %37, %cst_18 {dimension_numbers = #tpu.dot_dimension_numbers<[1], [0], [0], [1], [0, 0, 1, 1], [], []>} : vector<8x128xbf16>, vector<128x128xbf16>, vector<8x128xf32> -> vector<8x128xf32>
    %cst_19 = arith.constant dense<0.000000e+00> : vector<8xf32>
    %39 = vector.multi_reduction <add>, %38, %cst_19 [1] : vector<8x128xf32> to vector<8xf32>
    %40 = vector.shape_cast %39 : vector<8xf32> to vector<8x1xf32>
    %cst_20 = arith.constant 1.280000e+02 : f32
    %41 = vector.broadcast %cst_20 : f32 to vector<8x1xf32>
    %42 = arith.divf %40, %41 : vector<8x1xf32>
    %43 = arith.mulf %38, %38 : vector<8x128xf32>
    %cst_21 = arith.constant dense<0.000000e+00> : vector<8xf32>
    %44 = vector.multi_reduction <add>, %43, %cst_21 [1] : vector<8x128xf32> to vector<8xf32>
    %45 = vector.shape_cast %44 : vector<8xf32> to vector<8x1xf32>
    %cst_22 = arith.constant 1.280000e+02 : f32
    %46 = vector.broadcast %cst_22 : f32 to vector<8x1xf32>
    %47 = arith.divf %45, %46 : vector<8x1xf32>
    %48 = arith.mulf %42, %42 : vector<8x1xf32>
    %49 = arith.subf %47, %48 : vector<8x1xf32>
    %cst_23 = arith.constant 0.000000e+00 : f32
    %50 = vector.broadcast %cst_23 : f32 to vector<8x1xf32>
    %51 = arith.maximumf %49, %50 : vector<8x1xf32>
    %52 = vector.broadcast %42 : vector<8x1xf32> to vector<8x128xf32>
    %53 = arith.subf %38, %52 : vector<8x128xf32>
    %cst_24 = arith.constant 9.99999974E-6 : f32
    %54 = vector.broadcast %cst_24 : f32 to vector<8x1xf32>
    %55 = arith.addf %51, %54 : vector<8x1xf32>
    %56 = math.rsqrt %55 : vector<8x1xf32>
    %57 = vector.broadcast %56 : vector<8x1xf32> to vector<8x128xf32>
    %58 = arith.mulf %53, %57 : vector<8x128xf32>
    %c0_25 = arith.constant 0 : index
    %c0_26 = arith.constant 0 : index
    %59 = vector.load %arg5[%c0_25, %c0_26] : memref<1x128xf32, #tpu.memory_space<vmem>>, vector<1x128xf32>
    %60 = vector.broadcast %59 : vector<1x128xf32> to vector<8x128xf32>
    %61 = arith.mulf %58, %60 : vector<8x128xf32>
    %c0_27 = arith.constant 0 : index
    %c0_28 = arith.constant 0 : index
    %62 = vector.load %arg6[%c0_27, %c0_28] : memref<1x128xf32, #tpu.memory_space<vmem>>, vector<1x128xf32>
    %63 = vector.broadcast %62 : vector<1x128xf32> to vector<8x128xf32>
    %64 = arith.addf %61, %63 : vector<8x128xf32>
    %65 = arith.addf %64, %32 : vector<8x128xf32>
    %66 = arith.negf %65 : vector<8x128xf32>
    %67 = math.exp %66 : vector<8x128xf32>
    %cst_29 = arith.constant 1.000000e+00 : f32
    %68 = vector.broadcast %cst_29 : f32 to vector<8x128xf32>
    %69 = arith.addf %68, %67 : vector<8x128xf32>
    %70 = arith.divf %68, %69 : vector<8x128xf32>
    %cst_30 = arith.constant 1.000000e+00 : f32
    %71 = vector.broadcast %cst_30 : f32 to vector<8x128xf32>
    %72 = arith.subf %71, %70 : vector<8x128xf32>
    %73 = arith.mulf %72, %1 : vector<8x128xf32>
    %74 = arith.mulf %70, %35 : vector<8x128xf32>
    %75 = arith.addf %73, %74 : vector<8x128xf32>
    %c0_31 = arith.constant 0 : index
    %c0_32 = arith.constant 0 : index
    %76 = vector.load %arg9[%c0_31, %c0_32] : memref<8x128xf32, #tpu.memory_space<vmem>>, vector<8x128xf32>
    tpu.vector_store %arg9[%c0_31, %c0_32], %75 {strides = array<i32>} : memref<8x128xf32, #tpu.memory_space<vmem>>, vector<8x128xf32>,
    return
  }
  func.func @transform_0(%arg0: i32) -> (i32, i32) {
    %c0_i32 = arith.constant 0 : i32
    %c0_i32_0 = arith.constant 0 : i32
    return %arg0, %c0_i32 : i32, i32
  }
  func.func @transform_1(%arg0: i32) -> (i32, i32) {
    %c0_i32 = arith.constant 0 : i32
    %c0_i32_0 = arith.constant 0 : i32
    return %arg0, %c0_i32 : i32, i32
  }
  func.func @transform_2(%arg0: i32) -> (i32, i32) {
    %c0_i32 = arith.constant 0 : i32
    %c0_i32_0 = arith.constant 0 : i32
    %c0_i32_1 = arith.constant 0 : i32
    return %c0_i32, %c0_i32_0 : i32, i32
  }
  func.func @transform_3(%arg0: i32) -> (i32, i32) {
    %c0_i32 = arith.constant 0 : i32
    %c0_i32_0 = arith.constant 0 : i32
    %c0_i32_1 = arith.constant 0 : i32
    return %c0_i32, %c0_i32_0 : i32, i32
  }
  func.func @transform_4(%arg0: i32) -> (i32, i32) {
    %c0_i32 = arith.constant 0 : i32
    %c0_i32_0 = arith.constant 0 : i32
    %c0_i32_1 = arith.constant 0 : i32
    return %c0_i32, %c0_i32_0 : i32, i32
  }
  func.func @transform_5(%arg0: i32) -> (i32, i32) {
    %c0_i32 = arith.constant 0 : i32
    %c0_i32_0 = arith.constant 0 : i32
    %c0_i32_1 = arith.constant 0 : i32
    return %c0_i32, %c0_i32_0 : i32, i32
  }
  func.func @transform_6(%arg0: i32) -> (i32, i32) {
    %c0_i32 = arith.constant 0 : i32
    %c0_i32_0 = arith.constant 0 : i32
    %c0_i32_1 = arith.constant 0 : i32
    return %c0_i32, %c0_i32_0 : i32, i32
  }
  func.func @transform_7(%arg0: i32) -> (i32, i32) {
    %c0_i32 = arith.constant 0 : i32
    %c0_i32_0 = arith.constant 0 : i32
    %c0_i32_1 = arith.constant 0 : i32
    return %c0_i32, %c0_i32_0 : i32, i32
  }
  func.func @transform_8(%arg0: i32) -> (i32, i32) {
    %c0_i32 = arith.constant 0 : i32
    %c0_i32_0 = arith.constant 0 : i32
    return %arg0, %c0_i32 : i32, i32
  }
}

</mosaic_0001>

<bundles_post_ra>
// kernel: tpu_custom_call.1
= control target key start
LH: loop header
LB: loop body
LE: loop exit
PB: predicated region body
PF: predicated region fallthrough
CT: control target
= control target key end

     0   :  { %s1690_s0 = inlined_call_operand.hbm [shape: f32[16,128], index: 0, kind: input, shape index: {}]   ;;  %s1691_s1 = inlined_call_operand.hbm [shape: f32[16,128], index: 1, kind: input, shape index: {}]   ;;  %s1692_s2 = inlined_call_operand.hbm [shape: bf16[128,128], index: 2, kind: input, shape index: {}]   ;;  %s1693_s3 = inlined_call_operand.hbm [shape: bf16[128,256], index: 3, kind: input, shape index: {}]   ;;  %s1694_s4 = inlined_call_operand.hbm [shape: f32[1,128], index: 4, kind: input, shape index: {}]   ;;  %s1695_s5 = inlined_call_operand.hbm [shape: f32[1,128], index: 5, kind: input, shape index: {}]   ;;  %s1696_s6 = inlined_call_operand.vmem [shape: f32[1,256], index: 6, kind: input, shape index: {}]   ;;  %s1697_s7 = inlined_call_operand.vmem [shape: f32[1,256], index: 7, kind: input, shape index: {}]   ;;  %s1698_s8 = inlined_call_operand.hbm [shape: f32[16,128], index: 8, kind: output, shape index: {}]  }
   0x1   :  { %1702 = sst [smem:[#allocation23_spill]] %s1692_s2 }
   0x2   :  { %1703 = sst [smem:[#allocation24_spill]] %s1693_s3 }
   0x3   :  { %1704 = sst [smem:[#allocation25_spill]] %s1694_s4 }
   0x4   :  { %1705 = sst [smem:[#allocation26_spill]] %s1695_s5 }
   0x5   :  { %13 = vsyncpa [#allocation3], 0 }
   0x6   :  { %15 = vsyncpa [#allocation3 + $0x1], 0 }
   0x7   :  { %16 = vsyncpa [#allocation6], 0 }
   0x8   :  { %18 = vsyncpa [#allocation6 + $0x1], 0 }
   0x9   :  { %19 = vsyncpa [#allocation9], 0 }
   0xa   :  { %20 = vsyncpa [#allocation12], 0 }
   0xb   :  { %21 = vsyncpa [#allocation4], 0 }
   0xc   :  { %23 = vsyncpa [#allocation4 + $0x1], 0  ;;  %s1467_s27 = smov 0   ;;  %s1469_s28 = smov 0  }
   0xd   :  { %s1471_s29 = smov 0   ;;  %s1473_s30 = smov 0  }
   0xe LB: > { %1706 = sst [smem:[#allocation20_spill]] %s1406_s29  ;;  %s1491_s12 = sadd.s32 4294967295, %s1410_s30   ;;  %s1410_s30 = sphi %s1473_s30, %s1721_s30   ;;  %s1406_s29 = sphi %s1471_s29, %s1723_s29   ;;  %s1402_s28 = sphi %s1469_s28, %s1725_s28   ;;  %s1398_s27 = sphi %s1467_s27, %s1724_s27  }
   0xf   : > { %s1707_s2 = sld [smem:[#allocation23_spill]]  ;;  %p893_p0 = scmp.ge.s32.totalorder %s1410_s30, 1 }
  0x10   : > { %p50_p1 = scmp.eq.s32.totalorder %s1491_s12, 0  ;;  %p238_p2 = scmp.lt.s32.totalorder %s1410_s30, 3 }
  0x11   : > { %s1412_s14 = smov [#allocation7]   ;;  %s1709_s3 = sld [smem:[#allocation24_spill]] }
  0x12   : > { %p1496_p3 = pnand %p893_p0, %p238_p2  ;;  %s251_s15 = sshll.u32 %s1412_s14, 4  ;;  %s252_s15 = int_to_ptr.vmem [resolvable:$true] %s251_s15 }
  0x13   : > { %s1413_s20 = smov [#allocation8]   ;;  %s1414_s22 = smov 64  }
  0x14   : > { %p1058_p4 = pneg %p1496_p3  ;;  %s265_s21 = sshll.u32 %s1413_s20, 4  ;;  %s266_s21 = int_to_ptr.vmem [resolvable:$true] %s265_s21 }
  0x15   : > { %s249_s11 = sshll.u32 %s1707_s2, 4  ;;  %s1415_s23 = smov 4   ;;  %s250_s11 = int_to_ptr.hbm [resolvable:$true] %s249_s11 }
  0x16   : > { %p1508_p6 = pnand %p1058_p4, %p50_p1  ;;  %s1416_s24 = smov 128  }
  0x17   : > { %s263_s18 = sshll.u32 %s1709_s3, 4  ;;  %s1417_s25 = smov 8   ;;  %s264_s18 = int_to_ptr.hbm [resolvable:$true] %s263_s18 }
  0x18   : > { %1061 = dma.hbm_to_vmem [thread:$0]  (!%p1508_p6), %s250_s11, 1024, %s252_s15, [#allocation6], %s1414_s22, %s1414_s22, %s1415_s23  }
  0x19   : > { %1064 = dma.hbm_to_vmem [thread:$0]  (!%p1508_p6), %s264_s18, 2048, %s266_s21, [#allocation9], %s1416_s24, %s1416_s24, %s1417_s25  }
  0x1a   : > { %s1711_s4 = sld [smem:[#allocation25_spill]]  ;;  %s1418_s14 = smov [#allocation10]  }
  0x1b   : > { %s280_s11 = sshll.u32 %s1418_s14, 4  ;;  %s1712_s5 = sld [smem:[#allocation26_spill]]  ;;  %s281_s11 = int_to_ptr.vmem [resolvable:$true] %s280_s11 }
  0x1c   : > { %s1419_s18 = smov [#allocation11]   ;;  %s892_s21 = sadd.s32 4294967294, %s1410_s30  }
  0x1d   : > { %s292_s20 = sshll.u32 %s1419_s18, 4  ;;  %s1528_s22 = sadd.s32 1, %s1410_s30   ;;  %s293_s20 = int_to_ptr.vmem [resolvable:$true] %s292_s20 }
  0x1e   : > { %1713 = sst [smem:[#allocation21_spill]] %s1528_s22  ;;  %s33_s23 = ssub.s32 %s1410_s30, %s1528_s22 }
  0x1f   : > { %s36_s24 = sadd.s32 1, %s1406_s29  ;;  %p34_p7 = scmp.eq.s32.totalorder %s33_s23, 0 }
  0x20   : > { %s278_s10 = sshll.u32 %s1711_s4, 4  ;;  %p43_p8 = scmp.ne.s32.totalorder %s1406_s29, %s1402_s28  ;;  %s279_s10 = int_to_ptr.hbm [resolvable:$true] %s278_s10 }
  0x21   : > { %s290_s17 = sshll.u32 %s1712_s5, 4  ;;  %p44_p9 = scmp.eq.s32.totalorder %s1410_s30, 0  ;;  %s291_s17 = int_to_ptr.hbm [resolvable:$true] %s290_s17 }
  0x22   : > { %1067 = dma.hbm_to_vmem [thread:$0]  (!%p1508_p6), %s279_s10, 16, %s281_s11, [#allocation9]  }
  0x23   : > { %1070 = dma.hbm_to_vmem [thread:$0]  (!%p1508_p6), %s291_s17, 16, %s293_s20, [#allocation12]  }
  0x24   : > { %p49_p10 = scmp.ne.s32.totalorder %s1402_s28, %s1398_s27  ;;  %p1541_p11 = por %p44_p9, %p43_p8 }
  0x25   : > { %s1539_s25 = scalar_select %p34_p7, %s1406_s29, %s36_s24  }
  0x26   : > { %p1547_p12 = por %p50_p1, %p49_p10  ;;  %p225_p13 = scmp.eq.s32.totalorder %s1491_s12, 1 }
  0x27   : > { %1714 = sst [smem:[#allocation22_spill]] %s1539_s25  ;;  %p231_p0 = scmp.eq.s32.totalorder %s892_s21, 1 }
  0x28   : > { %p1086_p2 = scmp.lt.s32.totalorder %s1410_s30, 2  ;;  %s309_s9 = sand.u32 1, %s1406_s29  }
  0x29   : > { %p1554_p4 = por %p225_p13, %p43_p8  ;;  %p1558_p6 = por %p231_p0, %p49_p10 }
  0x2a   : > { %s1562_s11 = sshll.u32 %s309_s9, 3  ;;  %s900_s15 = sshll.u32 %s1410_s30, 3 }
  0x2b   : > { %s317_s18 = scalar_lea.hbm %s1690_s0, %s900_s15  ;;  %s313_s20 = scalar_lea.vmem [#allocation2], %s1562_s11 }
  0x2c   : > { %s321_s21 = sshll.u32 %s313_s20, 4  ;;  %s319_s23 = sshll.u32 %s317_s18, 4  ;;  %s322_s21 = int_to_ptr.vmem [resolvable:$true] %s321_s21  ;;  %s320_s23 = int_to_ptr.hbm [resolvable:$true] %s319_s23 }
  0x2d   : > { %p1571_p7 = pnand %p1086_p2, %p1541_p11  ;;  %s336_s4 = scalar_lea.hbm %s1691_s1, %s900_s15 }
  0x2e   : > { %s328_s5 = sand.u32 1, %s1410_s30   ;;  %s310_s25 = scalar_lea.sflag [#allocation3], %s309_s9 }
  0x2f   : > { %s1268_s16 = sshra.s32 %s320_s23, 4  ;;  %p1272_p9 = pneg %p1571_p7  ;;  %s1269_s16 = int_to_ptr.hbm [resolvable:$true] %s1268_s16 }
  0x30   : > { %s1270_s17 = scalar_lea.hbm %s1269_s16, 8  ;;  %s1275_s20 = scalar_lea.hbm %s1690_s0, 16 }
  0x31   : > { %p1271_p8 = scmp.ne.s32.totalorder %s1269_s16, %s1270_s17  ;;  %p1276_p13 = scmp.lt.s32.totalorder %s1269_s16, %s1690_s0 }
  0x32   : > { %p1277_p0 = scmp.lt.s32.totalorder %s1275_s20, %s1270_s17 }
  0x33   : > { %p1273_p10 = pnand %p1272_p9, %p1271_p8 }
  0x34   : > { %p1278_p2 = por %p1277_p0, %p1276_p13 }
  0x35   : > { %p1274_p11 = pneg %p1273_p10 }
  0x37   : > { %p1279_p5 = pnand %p1278_p2, %p1274_p11 }
  0x39   : > { %1282 = shalt.err (!%p1279_p5)
}
  0x3a   : > { %1074 = dma.hbm_to_vmem [thread:$0]  (!%p1571_p7), %s320_s23, 128, %s322_s21, %s310_s25  }
  0x3b   : > { %s338_s9 = sshll.u32 %s336_s4, 4  ;;  %s332_s15 = scalar_lea.vmem [#allocation5], %s1562_s11  ;;  %s339_s9 = int_to_ptr.hbm [resolvable:$true] %s338_s9 }
  0x3c   : > { %s340_s29 = sshll.u32 %s332_s15, 4  ;;  %s329_s26 = scalar_lea.sflag [#allocation6], %s328_s5  ;;  %s341_s29 = int_to_ptr.vmem [resolvable:$true] %s340_s29 }
  0x3d   : > { %s1298_s18 = sshra.s32 %s339_s9, 4  ;;  %s1305_s20 = scalar_lea.hbm %s1691_s1, 16  ;;  %s1299_s18 = int_to_ptr.hbm [resolvable:$true] %s1298_s18 }
  0x3e   : > { %s1300_s22 = scalar_lea.hbm %s1299_s18, 8  ;;  %p1306_p5 = scmp.lt.s32.totalorder %s1299_s18, %s1691_s1 }
  0x3f   : > { %p1301_p8 = scmp.ne.s32.totalorder %s1299_s18, %s1300_s22  ;;  %p1307_p13 = scmp.lt.s32.totalorder %s1305_s20, %s1300_s22 }
  0x41   : > { %p1303_p10 = pnand %p1301_p8, %p1272_p9  ;;  %p1308_p0 = por %p1307_p13, %p1306_p5 }
  0x43   : > { %p1304_p11 = pneg %p1303_p10 }
  0x45   : > { %p1309_p2 = pnand %p1308_p0, %p1304_p11 }
  0x47   : > { %1312 = shalt.err (!%p1309_p2)
}
  0x48   : > { %1077 = dma.hbm_to_vmem [thread:$0]  (!%p1571_p7), %s339_s9, 128, %s341_s29, %s329_s26  }
  0x49   : > { %349 = sbr.rel (%p1496_p3) target bundleno = 740 (0x2e4), region = 52  ;;  %s1607_s4 = sand.u32 (!%p1496_p3), 1, %s1402_s28  }
  0x4a   : > { %s1610_s5 = sshll.u32 (!%p1496_p3), %s1607_s4, 3  ;;  %s352_s11 = scalar_lea.sflag (!%p1496_p3), [#allocation3], %s1607_s4 }
  0x4b   : > { %s355_s22 = scalar_lea.vmem (!%p1496_p3), [#allocation2], %s1610_s5 }
  0x4e   : > { %1373 = dma.done.wait (%p1547_p12), %s352_s11, 128  }
  0x4f   : > { %1375 = vsyncadd (%p1547_p12), %s352_s11, 4294967168  ;;  %s361_s29 = sand.u32 1, %s1491_s12   ;;  %s365_s21 = scalar_lea.vmem [#allocation5], %s1610_s5 }
  0x50   : > { %s362_s13 = scalar_lea.sflag [#allocation6], %s361_s29 }
  0x51   : > { %1377 = dma.done.wait (%p1547_p12), %s362_s13, 128  }
  0x52   : > { %1379 = vsyncadd (%p1547_p12), %s362_s13, 4294967168 }
  0x53   : > { %1381 = dma.done.wait (%p50_p1), [#allocation6], 1024  }
  0x54   : > { %1383 = vsyncadd (%p50_p1), [#allocation6], 4294966272 }
  0x55   : > { %1385 = dma.done.wait (%p50_p1), [#allocation9], 2064  }
  0x56   : > { %1387 = vsyncadd (%p50_p1), [#allocation9], 4294965232 }
  0x57   : > { %1389 = dma.done.wait (%p50_p1), [#allocation12], 16  }
  0x58   : > { %1391 = vsyncadd (%p50_p1), [#allocation12], 4294967280  ;;  %v969_v0 = vld [vmem:[#allocation8 + $0x70] sm:$0xf]  ;;  %v1027_v1 = vld [vmem:[#allocation8 + $0x74] sm:$0xf0] }
  0x59   : > { %v1026_v2 = vld [vmem:[#allocation8 + $0x74] sm:$0xf]  ;;  %v970_v3 = vor.u32 %v1027_v1, %v969_v0  ;;  %v971_v4 = vld [vmem:[#allocation8 + $0x78] sm:$0xf0]  ;;  %v961_v5 = vld [vmem:[#allocation8 + $0x60] sm:$0xf] }
  0x5a   : > { %v1025_v6 = vld [vmem:[#allocation8 + $0x64] sm:$0xf0]  ;;  %v974_v7 = vor.u32 %v1026_v2, %v971_v4  ;;  %v1024_v8 = vld [vmem:[#allocation8 + $0x64] sm:$0xf]  ;;  %v963_v9 = vld [vmem:[#allocation8 + $0x68] sm:$0xf0] }
  0x5b   : > { %523 = vmatpush.bf16.msra.mxu0 %v970_v3  ;;  %v962_v10 = vor.u32 %v1025_v6, %v961_v5  ;;  %v966_v11 = vor.u32 %v1024_v8, %v963_v9  ;;  %v953_v12 = vld [vmem:[#allocation8 + $0x50] sm:$0xf]  ;;  %v1023_v13 = vld [vmem:[#allocation8 + $0x54] sm:$0xf0]  ;;  %v1022_v14 = vld [vmem:[#allocation8 + $0x54] sm:$0xf] }
  0x5c   : > { %536 = vmatpush.bf16.msra.mxu1 %v974_v7  ;;  %v955_v15 = vld [vmem:[#allocation8 + $0x58] sm:$0xf0]  ;;  %v954_v16 = vor.u32 %v1023_v13, %v953_v12  ;;  %v945_v18 = vld [vmem:[#allocation8 + $0x40] sm:$0xf]  ;;  %v1021_v19 = vld [vmem:[#allocation8 + $0x44] sm:$0xf0] }
  0x5d   : > { %v958_v17 = vor.u32 %v1022_v14, %v955_v15  ;;  %v1020_v20 = vld [vmem:[#allocation8 + $0x44] sm:$0xf]  ;;  %v947_v21 = vld [vmem:[#allocation8 + $0x48] sm:$0xf0]  ;;  %v946_v22 = vor.u32 %v1021_v19, %v945_v18  ;;  %v937_v24 = vld [vmem:[#allocation8 + $0x30] sm:$0xf] }
  0x5e   : > { %v950_v23 = vor.u32 %v1020_v20, %v947_v21  ;;  %v1019_v25 = vld [vmem:[#allocation8 + $0x34] sm:$0xf0]  ;;  %v1018_v26 = vld [vmem:[#allocation8 + $0x34] sm:$0xf]  ;;  %v939_v27 = vld [vmem:[#allocation8 + $0x38] sm:$0xf0] }
  0x5f   : > { %524 = vmatpush.bf16.msra.mxu0 %v962_v10  ;;  %v938_v28 = vor.u32 %v1019_v25, %v937_v24  ;;  %v942_v29 = vor.u32 %v1018_v26, %v939_v27  ;;  %v929_v30 = vld [vmem:[#allocation8 + $0x20] sm:$0xf]  ;;  %v1017_v31 = vld [vmem:[#allocation8 + $0x24] sm:$0xf0]  ;;  %v1016_v32 = vld [vmem:[#allocation8 + $0x24] sm:$0xf] }
  0x60   : > { %537 = vmatpush.bf16.msra.mxu1 %v966_v11  ;;  %v931_v33 = vld [vmem:[#allocation8 + $0x28] sm:$0xf0]  ;;  %v930_v34 = vor.u32 %v1017_v31, %v929_v30  ;;  %v921_v36 = vld [vmem:[#allocation8 + $0x10] sm:$0xf]  ;;  %v1015_v37 = vld [vmem:[#allocation8 + $0x14] sm:$0xf0] }
  0x61   : > { %v934_v35 = vor.u32 %v1016_v32, %v931_v33  ;;  %v1014_v38 = vld [vmem:[#allocation8 + $0x14] sm:$0xf]  ;;  %v923_v39 = vld [vmem:[#allocation8 + $0x18] sm:$0xf0]  ;;  %v922_v40 = vor.u32 %v1015_v37, %v921_v36  ;;  %v913_v42 = vld [vmem:[#allocation8] sm:$0xf] }
  0x62   : > { %v926_v41 = vor.u32 %v1014_v38, %v923_v39  ;;  %v1013_v43 = vld [vmem:[#allocation8 + $0x4] sm:$0xf0]  ;;  %v1012_v44 = vld [vmem:[#allocation8 + $0x4] sm:$0xf]  ;;  %v915_v45 = vld [vmem:[#allocation8 + $0x8] sm:$0xf0] }
  0x63   : > { %525 = vmatpush.bf16.msra.mxu0 %v954_v16  ;;  %v914_v46 = vor.u32 %v1013_v43, %v913_v42  ;;  %v1638_v47 = vld [vmem:[%s365_s21] sm:$0xff]  ;;  %v918_v48 = vor.u32 %v1012_v44, %v915_v45  ;;  %v1420_v58 = vmov 256.0   ;;  %v1033_v0 = vld [vmem:[#allocation7 + $0x28] sm:$0xff]  ;;  %v1032_v2 = vld [vmem:[#allocation7 + $0x20] sm:$0xff]  ;;  %v1421_v45 = vmov 128.0   ;;  %s1009_s9 = sshll.u32 %s1491_s12, 3 }
  0x64   : > { %538 = vmatpush.bf16.msra.mxu1 %v958_v17  ;;  %v426_v49 = vpack.c.bf16 %v1638_v47, %v1638_v47  ;;  %1136 = vrcp.f32 %v1420_v58  ;;  %v1035_v59 = vld [vmem:[#allocation7 + $0x38] sm:$0xff]  ;;  %v1034_v62 = vld [vmem:[#allocation7 + $0x30] sm:$0xff]  ;;  %v1029_v8 = vld [vmem:[#allocation7 + $0x8] sm:$0xff]  ;;  %s756_s18 = scalar_lea.hbm %s1698_s8, %s1009_s9  ;;  %s423_s16 = scalar_lea.vmem [#allocation13], %s1610_s5 }
  0x65   : > { %667 = vmatpush.bf16.msra.mxu2 %v1035_v59  ;;  %v1031_v4 = vld [vmem:[#allocation7 + $0x18] sm:$0xff]  ;;  %v1030_v6 = vld [vmem:[#allocation7 + $0x10] sm:$0xff]  ;;  %v1028_v11 = vld [vmem:[#allocation7] sm:$0xff]  ;;  %s758_s17 = sshll.u32 %s423_s16, 4  ;;  %s760_s20 = sshll.u32 %s756_s18, 4  ;;  %s759_s17 = int_to_ptr.vmem [resolvable:$true] %s758_s17  ;;  %s761_s20 = int_to_ptr.hbm [resolvable:$true] %s760_s20 }
  0x66   : > { %v592_v24 = vld [vmem:[%s1697_s7] sm:$0x3]  ;;  %s746_s12 = scalar_lea.sflag [#allocation4], %s1607_s4  ;;  %s1342_s2 = sshra.s32 %s761_s20, 4  ;;  %s1343_s2 = int_to_ptr.hbm [resolvable:$true] %s1342_s2 }
  0x67   : > { %526 = vmatpush.bf16.msra.mxu0 %v946_v22  ;;  %v584_v22 = vld [vmem:[%s1696_s6] sm:$0x3]  ;;  %v594_v32 = vperm.slane %v592_v24, 0  ;;  %v595_v33 = vperm.slane %v592_v24, 1  ;;  %s1344_s25 = scalar_lea.hbm %s1343_s2, 8  ;;  %p1349_p7 = scmp.lt.s32.totalorder %s1343_s2, %s1698_s8 }
  0x68   : > { %539 = vmatpush.bf16.msra.mxu1 %v950_v23  ;;  %v586_v27 = vperm.slane %v584_v22, 0  ;;  %v424_v36 = vld [vmem:[%s355_s22] sm:$0xff]  ;;  %p1345_p1 = scmp.ne.s32.totalorder %s1343_s2, %s1344_s25  ;;  %s1348_s22 = scalar_lea.hbm %s1698_s8, 16 }
  0x69   : > { %668 = vmatpush.bf16.msra.mxu2 %v1034_v62  ;;  %p1350_p9 = scmp.lt.s32.totalorder %s1348_s22, %s1344_s25 }
  0x6a   : > { %v1137_v60 = vpop.eup %1136  ;;  %p1346_p3 = pnand %p1345_p1, %p1554_p4 }
  0x6b   : > { %527 = vmatpush.bf16.msra.mxu0 %v938_v28  ;;  %v553_v61 = vmul.f32 256.0, %v1137_v60  ;;  %vm557_vm0 = vweird.f32 %v1137_v60  ;;  %v587_v28 = vperm.slane %v584_v22, 1  ;;  %p1351_p8 = por %p1350_p9, %p1349_p7 }
  0x6c   : > { %540 = vmatpush.bf16.msra.mxu1 %v942_v29  ;;  %p1347_p12 = pneg %p1346_p3 }
  0x6d   : > { %v554_v63 = vsub.f32 1.0, %v553_v61  ;;  %669 = vmatpush.bf16.msra.mxu2 %v1033_v0 }
  0x6e   : > { %p1352_p10 = pnand %p1351_p8, %p1347_p12 }
  0x6f   : > { %528 = vmatpush.bf16.msra.mxu0 %v930_v34  ;;  %v555_v1 = vmul.f32 %v1137_v60, %v554_v63 }
  0x70   : > { %541 = vmatpush.bf16.msra.mxu1 %v934_v35 }
  0x71   : > { %670 = vmatpush.bf16.msra.mxu2 %v1032_v2  ;;  %v556_v3 = vadd.f32 %v1137_v60, %v555_v1 }
  0x73   : > { %529 = vmatpush.bf16.msra.mxu0 %v922_v40  ;;  %v558_v7 = vsel %vm557_vm0, %v1137_v60, %v556_v3 }
  0x74   : > { %542 = vmatpush.bf16.msra.mxu1 %v926_v41 }
  0x75   : > { %671 = vmatpush.bf16.msra.mxu2 %v1031_v4  ;;  %v1134_v4 = vld [vmem:[#allocation10] ss:$0 sm:$0xff] }
  0x77   : > { %530 = vmatpush.bf16.msra.mxu0 %v914_v46 }
  0x78   : > { %543 = vmatpush.bf16.msra.mxu1 %v918_v48 }
  0x79   : > { %672 = vmatpush.bf16.msra.mxu2 %v1030_v6  ;;  %v1135_v6 = vld [vmem:[#allocation11] ss:$0 sm:$0xff] }
  0x7a   : > { %531 = vmatmul.bf16.vlgmr.msra.gmra.mxu0 %v426_v49 }
  0x7b   : > { %544 = vmatmul.bf16.vlgmr.msra.gmra.mxu1 %v426_v49 }
  0x7d   : > { %673 = vmatpush.bf16.msra.mxu2 %v1029_v8 }
  0x81   : > { %674 = vmatpush.bf16.msra.mxu2 %v1028_v11 }
  0xf7   : > { %v532_v50 = vpop.f32.mrf.mxu0 }
  0xf8   : > { %v545_v51 = vpop.f32.mrf.mxu1  ;;  %v560_v53 = vmul.f32 %v532_v50, %v532_v50 }
  0xf9   : > { %v549_v52 = vadd.f32 %v545_v51, %v532_v50  ;;  %v561_v54 = vmul.f32 %v545_v51, %v545_v51 }
  0xfb   : > { %550 = vadd.xlane.f32.xlu0 %v549_v52  ;;  %v562_v57 = vadd.f32 %v561_v54, %v560_v53 }
  0xff   : > { %v534_v55 = vpop.f32.mrf.mxu0 }
 0x100   : > { %v547_v56 = vpop.f32.mrf.mxu1 }
 0x103   : > { %563 = vadd.xlane.f32.xlu0 %v562_v57 }
 0x16e   : > { %v551_v5 = vpop.xlane.xlu0 %550 }
 0x16f   : > { %v559_v9 = vmul.f32 %v558_v7, %v551_v5 }
 0x171   : > { %v566_v12 = vmul.f32 %v559_v9, %v559_v9  ;;  %v569_v25 = vsub.f32 %v532_v50, %v559_v9  ;;  %v570_v26 = vsub.f32 %v545_v51, %v559_v9 }
 0x176   : > { %v564_v10 = vpop.xlane.xlu0 %563 }
 0x177   : > { %v565_v13 = vmul.f32 %v564_v10, %v558_v7 }
 0x179   : > { %v567_v14 = vsub.f32 %v565_v13, %v566_v12 }
 0x17b   : > { %v568_v15 = vmax.f32 %v567_v14, 0.0 }
 0x17d   : > { %v571_v16 = vadd.f32 1e-05, %v568_v15 }
 0x17f   : > { %1138 = vrsqrt.f32 %v571_v16  ;;  %vm578_vm2 = vweird.f32 %v571_v16 }
 0x180   : > { %1140 = vrcp.f32 %v1421_v45 }
 0x185   : > { %v1139_v17 = vpop.eup %1138 }
 0x186   : > { %v573_v18 = vmul.f32 %v1139_v17, %v571_v16  ;;  %vm579_vm1 = vweird.f32 %v1139_v17  ;;  %v1141_v46 = vpop.eup %1140 }
 0x187   : > { %vm580_vm3 = vmor %vm578_vm2, %vm579_vm1  ;;  %v683_v48 = vmul.f32 128.0, %v1141_v46  ;;  %vm687_vm4 = vweird.f32 %v1141_v46 }
 0x188   : > { %v574_v19 = vmul.f32 %v1139_v17, %v573_v18 }
 0x189   : > { %v684_v49 = vsub.f32 1.0, %v683_v48 }
 0x18a   : > { %v575_v20 = vmul.f32 0.5, %v574_v19 }
 0x18b   : > { %v685_v50 = vmul.f32 %v1141_v46, %v684_v49 }
 0x18c   : > { %v576_v21 = vsub.f32 1.5, %v575_v20 }
 0x18d   : > { %v686_v51 = vadd.f32 %v1141_v46, %v685_v50 }
 0x18e   : > { %v577_v23 = vmul.f32 %v1139_v17, %v576_v21 }
 0x18f   : > { %v688_v53 = vsel %vm687_vm4, %v1141_v46, %v686_v51 }
 0x190   : > { %v581_v29 = vsel %vm580_vm3, %v1139_v17, %v577_v23 }
 0x191   : > { %v582_v30 = vmul.f32 %v581_v29, %v569_v25  ;;  %v583_v31 = vmul.f32 %v581_v29, %v570_v26 }
 0x193   : > { %v590_v34 = vmul.f32 %v586_v27, %v582_v30  ;;  %v591_v35 = vmul.f32 %v587_v28, %v583_v31 }
 0x195   : > { %v598_v37 = vadd.f32 %v594_v32, %v590_v34  ;;  %v599_v38 = vadd.f32 %v595_v33, %v591_v35 }
 0x197   : > { %v600_v39 = vadd.f32 %v598_v37, %v424_v36 }
 0x199   : > { %v1650_v40 = vmax.f32 %v600_v39, 0.0 }
 0x19b   : > { %v602_v41 = vpack.c.bf16 %v1650_v40, %v1650_v40 }
 0x19d   : > { %675 = vmatmul.bf16.vlgmr.msra.gmra.mxu2 %v602_v41 }
 0x220   : > { %v676_v42 = vpop.f32.mrf.mxu2 }
 0x221   : > { %680 = vadd.xlane.f32.xlu1 %v676_v42  ;;  %v690_v43 = vmul.f32 %v676_v42, %v676_v42 }
 0x228   : > { %v678_v44 = vpop.f32.mrf.mxu2 }
 0x229   : > { %691 = vadd.xlane.f32.xlu1 %v690_v43 }
 0x294   : > { %v681_v52 = vpop.xlane.xlu1 %680 }
 0x295   : > { %v689_v54 = vmul.f32 %v688_v53, %v681_v52 }
 0x297   : > { %v694_v56 = vmul.f32 %v689_v54, %v689_v54  ;;  %v697_v3 = vsub.f32 %v676_v42, %v689_v54 }
 0x29c   : > { %v692_v55 = vpop.xlane.xlu1 %691 }
 0x29d   : > { %v693_v57 = vmul.f32 %v692_v55, %v688_v53 }
 0x29f   : > { %v695_v58 = vsub.f32 %v693_v57, %v694_v56 }
 0x2a1   : > { %v696_v59 = vmax.f32 %v695_v58, 0.0 }
 0x2a3   : > { %v698_v60 = vadd.f32 1e-05, %v696_v59 }
 0x2a5   : > { %1142 = vrsqrt.f32 %v698_v60  ;;  %vm705_vm6 = vweird.f32 %v698_v60 }
 0x2ab   : > { %v1143_v61 = vpop.eup %1142 }
 0x2ac   : > { %v700_v62 = vmul.f32 %v1143_v61, %v698_v60  ;;  %vm706_vm5 = vweird.f32 %v1143_v61 }
 0x2ad   : > { %vm707_vm7 = vmor %vm705_vm6, %vm706_vm5 }
 0x2ae   : > { %v701_v63 = vmul.f32 %v1143_v61, %v700_v62 }
 0x2b0   : > { %v702_v0 = vmul.f32 0.5, %v701_v63 }
 0x2b2   : > { %v703_v1 = vsub.f32 1.5, %v702_v0 }
 0x2b4   : > { %v704_v2 = vmul.f32 %v1143_v61, %v703_v1 }
 0x2b6   : > { %v708_v5 = vsel %vm707_vm7, %v1143_v61, %v704_v2 }
 0x2b7   : > { %v709_v7 = vmul.f32 %v708_v5, %v697_v3 }
 0x2b9   : > { %v714_v8 = vmul.f32 %v1134_v4, %v709_v7 }
 0x2bb   : > { %v719_v9 = vadd.f32 %v1135_v6, %v714_v8 }
 0x2bd   : > { %v720_v10 = vadd.f32 %v719_v9, %v599_v38 }
 0x2bf   : > { %v1007_v11 = vmul.f32 -1.442695, %v720_v10 }
 0x2c1   : > { %1144 = vpow2.f32 %v1007_v11 }
 0x2c7   : > { %v1145_v12 = vpop.eup %1144 }
 0x2c8   : > { %v724_v13 = vadd.f32 1.0, %v1145_v12 }
 0x2ca   : > { %1146 = vrcp.f32 %v724_v13  ;;  %v736_v17 = vand.u32 2147483648, %v724_v13  ;;  %v734_v19 = vand.u32 2147483647, %v724_v13  ;;  %vm730_vm9 = vweird.f32 %v724_v13 }
 0x2cc   : > { %v737_v21 = vor.u32 1.1754944e-38, %v736_v17  ;;  %vm735_vm11 = vcmp.eq.f32.partialorder %v734_v19, 8.507059e+37 }
 0x2d0   : > { %v1147_v14 = vpop.eup %1146 }
 0x2d1   : > { %v726_v15 = vmul.f32 %v1147_v14, %v724_v13  ;;  %vm731_vm8 = vweird.f32 %v1147_v14 }
 0x2d2   : > { %vm732_vm10 = vmor %vm730_vm9, %vm731_vm8 }
 0x2d3   : > { %v727_v16 = vsub.f32 1.0, %v726_v15 }
 0x2d5   : > { %v728_v18 = vmul.f32 %v1147_v14, %v727_v16 }
 0x2d7   : > { %v729_v20 = vadd.f32 %v1147_v14, %v728_v18 }
 0x2d9   : > { %v733_v22 = vsel %vm732_vm10, %v1147_v14, %v729_v20 }
 0x2da   : > { %v738_v23 = vsel %vm735_vm11, %v737_v21, %v733_v22 }
 0x2db   : > { %v740_v24 = vsub.f32 1.0, %v738_v23  ;;  %v742_v26 = vmul.f32 %v738_v23, %v1650_v40 }
 0x2dd   : > { %v741_v25 = vmul.f32 %v740_v24, %v1638_v47 }
 0x2df   : > { %v743_v27 = vadd.f32 %v742_v26, %v741_v25 }
 0x2e1   : > { %744 = vst [vmem:[%s423_s16] sm:$0xff] %v743_v27 }
 0x2e2   : > { %1355 = shalt.err (!%p1352_p10)
}
 0x2e3   : > { %1056 = dma.vmem_to_hbm [thread:$0]  (%p1554_p4), %s759_s17, 128, %s761_s20, %s746_s12  }
 0x2e4 PF: > { %s772_s4 = sand.u32 1, %s1398_s27   ;;  %p1720_p11 = scmp.ge.s32.totalorder %s1410_s30, 2 }
 0x2e5   : > { %s773_s21 = scalar_lea.sflag [#allocation4], %s772_s4 }
 0x2e6   : > { %p1079_p5 = pnand %p1720_p11, %p1558_p6 }
 0x2e8   : > { %p1080_p13 = pneg %p1079_p5 }
 0x2ea   : > { %1393 = dma.done.wait (%p1080_p13), %s773_s21, 128  }
 0x2eb   : > { %1395 = vsyncadd (%p1080_p13), %s773_s21, 4294967168  ;;  %s1721_s30 = sld [smem:[#allocation21_spill]]  ;;  %s1724_s27 = smov %s1402_s28 }
 0x2ec   : > { %s1722_s19 = sld [smem:[#allocation20_spill]] }
 0x2ed   : > { %s1723_s29 = sld [smem:[#allocation22_spill]] }
 0x2f1   : > { %p26_p0 = scmp.ge.s32.totalorder %s1721_s30, 4  }
 0x2f2   : > { %s1725_s28 = smov %s1722_s19 }
 0x2f3   :  { %28 = sbr.rel (!%p26_p0) target bundleno = 14 (0xe), region = 126 }
 0x2f8   :  { %779 = vsyncpa [#allocation3], 1 }
 0x2f9   :  { %781 = vsyncpa [#allocation3 + $0x1], 1 }
 0x2fa   :  { %782 = vsyncpa [#allocation6], 1 }
 0x2fb   :  { %784 = vsyncpa [#allocation6 + $0x1], 1 }
 0x2fc   :  { %785 = vsyncpa [#allocation9], 1 }
 0x2fd   :  { %786 = vsyncpa [#allocation12], 1 }
 0x2fe   :  { %787 = vsyncpa [#allocation4], 1 }
 0x2ff   :  { %789 = vsyncpa [#allocation4 + $0x1], 1 }

// kernel: tpu_custom_call.1
= control target key start
LH: loop header
LB: loop body
LE: loop exit
PB: predicated region body
PF: predicated region fallthrough
CT: control target
= control target key end

     0   :  { %s1690_s0 = inlined_call_operand.hbm [shape: f32[16,128], index: 0, kind: input, shape index: {}]   ;;  %s1691_s1 = inlined_call_operand.hbm [shape: f32[16,128], index: 1, kind: input, shape index: {}]   ;;  %s1692_s2 = inlined_call_operand.hbm [shape: bf16[128,128], index: 2, kind: input, shape index: {}]   ;;  %s1693_s3 = inlined_call_operand.hbm [shape: bf16[128,256], index: 3, kind: input, shape index: {}]   ;;  %s1694_s4 = inlined_call_operand.hbm [shape: f32[1,128], index: 4, kind: input, shape index: {}]   ;;  %s1695_s5 = inlined_call_operand.hbm [shape: f32[1,128], index: 5, kind: input, shape index: {}]   ;;  %s1696_s6 = inlined_call_operand.vmem [shape: f32[1,256], index: 6, kind: input, shape index: {}]   ;;  %s1697_s7 = inlined_call_operand.vmem [shape: f32[1,256], index: 7, kind: input, shape index: {}]   ;;  %s1698_s8 = inlined_call_operand.hbm [shape: f32[16,128], index: 8, kind: output, shape index: {}]  }
   0x1   :  { %1702 = sst [smem:[#allocation23_spill]] %s1692_s2 }
   0x2   :  { %1703 = sst [smem:[#allocation24_spill]] %s1693_s3 }
   0x3   :  { %1704 = sst [smem:[#allocation25_spill]] %s1694_s4 }
   0x4   :  { %1705 = sst [smem:[#allocation26_spill]] %s1695_s5 }
   0x5   :  { %13 = vsyncpa [#allocation3], 0 }
   0x6   :  { %15 = vsyncpa [#allocation3 + $0x1], 0 }
   0x7   :  { %16 = vsyncpa [#allocation6], 0 }
   0x8   :  { %18 = vsyncpa [#allocation6 + $0x1], 0 }
   0x9   :  { %19 = vsyncpa [#allocation9], 0 }
   0xa   :  { %20 = vsyncpa [#allocation12], 0 }
   0xb   :  { %21 = vsyncpa [#allocation4], 0 }
   0xc   :  { %23 = vsyncpa [#allocation4 + $0x1], 0  ;;  %s1467_s27 = smov 0   ;;  %s1469_s28 = smov 0  }
   0xd   :  { %s1471_s29 = smov 0   ;;  %s1473_s30 = smov 0  }
   0xe LB: > { %1706 = sst [smem:[#allocation20_spill]] %s1406_s29  ;;  %s1491_s12 = sadd.s32 4294967295, %s1410_s30   ;;  %s1410_s30 = sphi %s1473_s30, %s1721_s30   ;;  %s1406_s29 = sphi %s1471_s29, %s1723_s29   ;;  %s1402_s28 = sphi %s1469_s28, %s1725_s28   ;;  %s1398_s27 = sphi %s1467_s27, %s1724_s27  }
   0xf   : > { %s1707_s2 = sld [smem:[#allocation23_spill]]  ;;  %p893_p0 = scmp.ge.s32.totalorder %s1410_s30, 1 }
  0x10   : > { %p50_p1 = scmp.eq.s32.totalorder %s1491_s12, 0  ;;  %p238_p2 = scmp.lt.s32.totalorder %s1410_s30, 3 }
  0x11   : > { %s1412_s14 = smov [#allocation7]   ;;  %s1709_s3 = sld [smem:[#allocation24_spill]] }
  0x12   : > { %p1496_p3 = pnand %p893_p0, %p238_p2  ;;  %s251_s15 = sshll.u32 %s1412_s14, 4  ;;  %s252_s15 = int_to_ptr.vmem [resolvable:$true] %s251_s15 }
  0x13   : > { %s1413_s20 = smov [#allocation8]   ;;  %s1414_s22 = smov 64  }
  0x14   : > { %p1058_p4 = pneg %p1496_p3  ;;  %s265_s21 = sshll.u32 %s1413_s20, 4  ;;  %s266_s21 = int_to_ptr.vmem [resolvable:$true] %s265_s21 }
  0x15   : > { %s249_s11 = sshll.u32 %s1707_s2, 4  ;;  %s1415_s23 = smov 4   ;;  %s250_s11 = int_to_ptr.hbm [resolvable:$true] %s249_s11 }
  0x16   : > { %p1508_p6 = pnand %p1058_p4, %p50_p1  ;;  %s1416_s24 = smov 128  }
  0x17   : > { %s263_s18 = sshll.u32 %s1709_s3, 4  ;;  %s1417_s25 = smov 8   ;;  %s264_s18 = int_to_ptr.hbm [resolvable:$true] %s263_s18 }
  0x18   : > { %1061 = dma.hbm_to_vmem [thread:$0]  (!%p1508_p6), %s250_s11, 1024, %s252_s15, [#allocation6], %s1414_s22, %s1414_s22, %s1415_s23  }
  0x19   : > { %1064 = dma.hbm_to_vmem [thread:$0]  (!%p1508_p6), %s264_s18, 2048, %s266_s21, [#allocation9], %s1416_s24, %s1416_s24, %s1417_s25  }
  0x1a   : > { %s1711_s4 = sld [smem:[#allocation25_spill]]  ;;  %s1418_s14 = smov [#allocation10]  }
  0x1b   : > { %s280_s11 = sshll.u32 %s1418_s14, 4  ;;  %s1712_s5 = sld [smem:[#allocation26_spill]]  ;;  %s281_s11 = int_to_ptr.vmem [resolvable:$true] %s280_s11 }
  0x1c   : > { %s1419_s18 = smov [#allocation11]   ;;  %s892_s21 = sadd.s32 4294967294, %s1410_s30  }
  0x1d   : > { %s292_s20 = sshll.u32 %s1419_s18, 4  ;;  %s1528_s22 = sadd.s32 1, %s1410_s30   ;;  %s293_s20 = int_to_ptr.vmem [resolvable:$true] %s292_s20 }
  0x1e   : > { %1713 = sst [smem:[#allocation21_spill]] %s1528_s22  ;;  %s33_s23 = ssub.s32 %s1410_s30, %s1528_s22 }
  0x1f   : > { %s36_s24 = sadd.s32 1, %s1406_s29  ;;  %p34_p7 = scmp.eq.s32.totalorder %s33_s23, 0 }
  0x20   : > { %s278_s10 = sshll.u32 %s1711_s4, 4  ;;  %p43_p8 = scmp.ne.s32.totalorder %s1406_s29, %s1402_s28  ;;  %s279_s10 = int_to_ptr.hbm [resolvable:$true] %s278_s10 }
  0x21   : > { %s290_s17 = sshll.u32 %s1712_s5, 4  ;;  %p44_p9 = scmp.eq.s32.totalorder %s1410_s30, 0  ;;  %s291_s17 = int_to_ptr.hbm [resolvable:$true] %s290_s17 }
  0x22   : > { %1067 = dma.hbm_to_vmem [thread:$0]  (!%p1508_p6), %s279_s10, 16, %s281_s11, [#allocation9]  }
  0x23   : > { %1070 = dma.hbm_to_vmem [thread:$0]  (!%p1508_p6), %s291_s17, 16, %s293_s20, [#allocation12]  }
  0x24   : > { %p49_p10 = scmp.ne.s32.totalorder %s1402_s28, %s1398_s27  ;;  %p1541_p11 = por %p44_p9, %p43_p8 }
  0x25   : > { %s1539_s25 = scalar_select %p34_p7, %s1406_s29, %s36_s24  }
  0x26   : > { %p1547_p12 = por %p50_p1, %p49_p10  ;;  %p225_p13 = scmp.eq.s32.totalorder %s1491_s12, 1 }
  0x27   : > { %1714 = sst [smem:[#allocation22_spill]] %s1539_s25  ;;  %p231_p0 = scmp.eq.s32.totalorder %s892_s21, 1 }
  0x28   : > { %p1086_p2 = scmp.lt.s32.totalorder %s1410_s30, 2  ;;  %s309_s9 = sand.u32 1, %s1406_s29  }
  0x29   : > { %p1554_p4 = por %p225_p13, %p43_p8  ;;  %p1558_p6 = por %p231_p0, %p49_p10 }
  0x2a   : > { %s1562_s11 = sshll.u32 %s309_s9, 3  ;;  %s900_s15 = sshll.u32 %s1410_s30, 3 }
  0x2b   : > { %s317_s18 = scalar_lea.hbm %s1690_s0, %s900_s15  ;;  %s313_s20 = scalar_lea.vmem [#allocation2], %s1562_s11 }
  0x2c   : > { %s321_s21 = sshll.u32 %s313_s20, 4  ;;  %s319_s23 = sshll.u32 %s317_s18, 4  ;;  %s322_s21 = int_to_ptr.vmem [resolvable:$true] %s321_s21  ;;  %s320_s23 = int_to_ptr.hbm [resolvable:$true] %s319_s23 }
  0x2d   : > { %p1571_p7 = pnand %p1086_p2, %p1541_p11  ;;  %s336_s4 = scalar_lea.hbm %s1691_s1, %s900_s15 }
  0x2e   : > { %s328_s5 = sand.u32 1, %s1410_s30   ;;  %s310_s25 = scalar_lea.sflag [#allocation3], %s309_s9 }
  0x2f   : > { %s1268_s16 = sshra.s32 %s320_s23, 4  ;;  %p1272_p9 = pneg %p1571_p7  ;;  %s1269_s16 = int_to_ptr.hbm [resolvable:$true] %s1268_s16 }
  0x30   : > { %s1270_s17 = scalar_lea.hbm %s1269_s16, 8  ;;  %s1275_s20 = scalar_lea.hbm %s1690_s0, 16 }
  0x31   : > { %p1271_p8 = scmp.ne.s32.totalorder %s1269_s16, %s1270_s17  ;;  %p1276_p13 = scmp.lt.s32.totalorder %s1269_s16, %s1690_s0 }
  0x32   : > { %p1277_p0 = scmp.lt.s32.totalorder %s1275_s20, %s1270_s17 }
  0x33   : > { %p1273_p10 = pnand %p1272_p9, %p1271_p8 }
  0x34   : > { %p1278_p2 = por %p1277_p0, %p1276_p13 }
  0x35   : > { %p1274_p11 = pneg %p1273_p10 }
  0x37   : > { %p1279_p5 = pnand %p1278_p2, %p1274_p11 }
  0x39   : > { %1282 = shalt.err (!%p1279_p5)
}
  0x3a   : > { %1074 = dma.hbm_to_vmem [thread:$0]  (!%p1571_p7), %s320_s23, 128, %s322_s21, %s310_s25  }
  0x3b   : > { %s338_s9 = sshll.u32 %s336_s4, 4  ;;  %s332_s15 = scalar_lea.vmem [#allocation5], %s1562_s11  ;;  %s339_s9 = int_to_ptr.hbm [resolvable:$true] %s338_s9 }
  0x3c   : > { %s340_s29 = sshll.u32 %s332_s15, 4  ;;  %s329_s26 = scalar_lea.sflag [#allocation6], %s328_s5  ;;  %s341_s29 = int_to_ptr.vmem [resolvable:$true] %s340_s29 }
  0x3d   : > { %s1298_s18 = sshra.s32 %s339_s9, 4  ;;  %s1305_s20 = scalar_lea.hbm %s1691_s1, 16  ;;  %s1299_s18 = int_to_ptr.hbm [resolvable:$true] %s1298_s18 }
  0x3e   : > { %s1300_s22 = scalar_lea.hbm %s1299_s18, 8  ;;  %p1306_p5 = scmp.lt.s32.totalorder %s1299_s18, %s1691_s1 }
  0x3f   : > { %p1301_p8 = scmp.ne.s32.totalorder %s1299_s18, %s1300_s22  ;;  %p1307_p13 = scmp.lt.s32.totalorder %s1305_s20, %s1300_s22 }
  0x41   : > { %p1303_p10 = pnand %p1301_p8, %p1272_p9  ;;  %p1308_p0 = por %p1307_p13, %p1306_p5 }
  0x43   : > { %p1304_p11 = pneg %p1303_p10 }
  0x45   : > { %p1309_p2 = pnand %p1308_p0, %p1304_p11 }
  0x47   : > { %1312 = shalt.err (!%p1309_p2)
}
  0x48   : > { %1077 = dma.hbm_to_vmem [thread:$0]  (!%p1571_p7), %s339_s9, 128, %s341_s29, %s329_s26  }
  0x49   : > { %349 = sbr.rel (%p1496_p3) target bundleno = 740 (0x2e4), region = 52  ;;  %s1607_s4 = sand.u32 (!%p1496_p3), 1, %s1402_s28  }
  0x4a   : > { %s1610_s5 = sshll.u32 (!%p1496_p3), %s1607_s4, 3  ;;  %s352_s11 = scalar_lea.sflag (!%p1496_p3), [#allocation3], %s1607_s4 }
  0x4b   : > { %s355_s22 = scalar_lea.vmem (!%p1496_p3), [#allocation2], %s1610_s5 }
  0x4e   : > { %1373 = dma.done.wait (%p1547_p12), %s352_s11, 128  }
  0x4f   : > { %1375 = vsyncadd (%p1547_p12), %s352_s11, 4294967168  ;;  %s361_s29 = sand.u32 1, %s1491_s12   ;;  %s365_s21 = scalar_lea.vmem [#allocation5], %s1610_s5 }
  0x50   : > { %s362_s13 = scalar_lea.sflag [#allocation6], %s361_s29 }
  0x51   : > { %1377 = dma.done.wait (%p1547_p12), %s362_s13, 128  }
  0x52   : > { %1379 = vsyncadd (%p1547_p12), %s362_s13, 4294967168 }
  0x53   : > { %1381 = dma.done.wait (%p50_p1), [#allocation6], 1024  }
  0x54   : > { %1383 = vsyncadd (%p50_p1), [#allocation6], 4294966272 }
  0x55   : > { %1385 = dma.done.wait (%p50_p1), [#allocation9], 2064  }
  0x56   : > { %1387 = vsyncadd (%p50_p1), [#allocation9], 4294965232 }
  0x57   : > { %1389 = dma.done.wait (%p50_p1), [#allocation12], 16  }
  0x58   : > { %1391 = vsyncadd (%p50_p1), [#allocation12], 4294967280  ;;  %v969_v0 = vld [vmem:[#allocation8 + $0x70] sm:$0xf]  ;;  %v1027_v1 = vld [vmem:[#allocation8 + $0x74] sm:$0xf0] }
  0x59   : > { %v1026_v2 = vld [vmem:[#allocation8 + $0x74] sm:$0xf]  ;;  %v970_v3 = vor.u32 %v1027_v1, %v969_v0  ;;  %v971_v4 = vld [vmem:[#allocation8 + $0x78] sm:$0xf0]  ;;  %v961_v5 = vld [vmem:[#allocation8 + $0x60] sm:$0xf] }
  0x5a   : > { %v1025_v6 = vld [vmem:[#allocation8 + $0x64] sm:$0xf0]  ;;  %v974_v7 = vor.u32 %v1026_v2, %v971_v4  ;;  %v1024_v8 = vld [vmem:[#allocation8 + $0x64] sm:$0xf]  ;;  %v963_v9 = vld [vmem:[#allocation8 + $0x68] sm:$0xf0] }
  0x5b   : > { %523 = vmatpush.bf16.msra.mxu0 %v970_v3  ;;  %v962_v10 = vor.u32 %v1025_v6, %v961_v5  ;;  %v966_v11 = vor.u32 %v1024_v8, %v963_v9  ;;  %v953_v12 = vld [vmem:[#allocation8 + $0x50] sm:$0xf]  ;;  %v1023_v13 = vld [vmem:[#allocation8 + $0x54] sm:$0xf0]  ;;  %v1022_v14 = vld [vmem:[#allocation8 + $0x54] sm:$0xf] }
  0x5c   : > { %536 = vmatpush.bf16.msra.mxu1 %v974_v7  ;;  %v955_v15 = vld [vmem:[#allocation8 + $0x58] sm:$0xf0]  ;;  %v954_v16 = vor.u32 %v1023_v13, %v953_v12  ;;  %v945_v18 = vld [vmem:[#allocation8 + $0x40] sm:$0xf]  ;;  %v1021_v19 = vld [vmem:[#allocation8 + $0x44] sm:$0xf0] }
  0x5d   : > { %v958_v17 = vor.u32 %v1022_v14, %v955_v15  ;;  %v1020_v20 = vld [vmem:[#allocation8 + $0x44] sm:$0xf]  ;;  %v947_v21 = vld [vmem:[#allocation8 + $0x48] sm:$0xf0]  ;;  %v946_v22 = vor.u32 %v1021_v19, %v945_v18  ;;  %v937_v24 = vld [vmem:[#allocation8 + $0x30] sm:$0xf] }
  0x5e   : > { %v950_v23 = vor.u32 %v1020_v20, %v947_v21  ;;  %v1019_v25 = vld [vmem:[#allocation8 + $0x34] sm:$0xf0]  ;;  %v1018_v26 = vld [vmem:[#allocation8 + $0x34] sm:$0xf]  ;;  %v939_v27 = vld [vmem:[#allocation8 + $0x38] sm:$0xf0] }
  0x5f   : > { %524 = vmatpush.bf16.msra.mxu0 %v962_v10  ;;  %v938_v28 = vor.u32 %v1019_v25, %v937_v24  ;;  %v942_v29 = vor.u32 %v1018_v26, %v939_v27  ;;  %v929_v30 = vld [vmem:[#allocation8 + $0x20] sm:$0xf]  ;;  %v1017_v31 = vld [vmem:[#allocation8 + $0x24] sm:$0xf0]  ;;  %v1016_v32 = vld [vmem:[#allocation8 + $0x24] sm:$0xf] }
  0x60   : > { %537 = vmatpush.bf16.msra.mxu1 %v966_v11  ;;  %v931_v33 = vld [vmem:[#allocation8 + $0x28] sm:$0xf0]  ;;  %v930_v34 = vor.u32 %v1017_v31, %v929_v30  ;;  %v921_v36 = vld [vmem:[#allocation8 + $0x10] sm:$0xf]  ;;  %v1015_v37 = vld [vmem:[#allocation8 + $0x14] sm:$0xf0] }
  0x61   : > { %v934_v35 = vor.u32 %v1016_v32, %v931_v33  ;;  %v1014_v38 = vld [vmem:[#allocation8 + $0x14] sm:$0xf]  ;;  %v923_v39 = vld [vmem:[#allocation8 + $0x18] sm:$0xf0]  ;;  %v922_v40 = vor.u32 %v1015_v37, %v921_v36  ;;  %v913_v42 = vld [vmem:[#allocation8] sm:$0xf] }
  0x62   : > { %v926_v41 = vor.u32 %v1014_v38, %v923_v39  ;;  %v1013_v43 = vld [vmem:[#allocation8 + $0x4] sm:$0xf0]  ;;  %v1012_v44 = vld [vmem:[#allocation8 + $0x4] sm:$0xf]  ;;  %v915_v45 = vld [vmem:[#allocation8 + $0x8] sm:$0xf0] }
  0x63   : > { %525 = vmatpush.bf16.msra.mxu0 %v954_v16  ;;  %v914_v46 = vor.u32 %v1013_v43, %v913_v42  ;;  %v1638_v47 = vld [vmem:[%s365_s21] sm:$0xff]  ;;  %v918_v48 = vor.u32 %v1012_v44, %v915_v45  ;;  %v1420_v58 = vmov 256.0   ;;  %v1033_v0 = vld [vmem:[#allocation7 + $0x28] sm:$0xff]  ;;  %v1032_v2 = vld [vmem:[#allocation7 + $0x20] sm:$0xff]  ;;  %v1421_v45 = vmov 128.0   ;;  %s1009_s9 = sshll.u32 %s1491_s12, 3 }
  0x64   : > { %538 = vmatpush.bf16.msra.mxu1 %v958_v17  ;;  %v426_v49 = vpack.c.bf16 %v1638_v47, %v1638_v47  ;;  %1136 = vrcp.f32 %v1420_v58  ;;  %v1035_v59 = vld [vmem:[#allocation7 + $0x38] sm:$0xff]  ;;  %v1034_v62 = vld [vmem:[#allocation7 + $0x30] sm:$0xff]  ;;  %v1029_v8 = vld [vmem:[#allocation7 + $0x8] sm:$0xff]  ;;  %s756_s18 = scalar_lea.hbm %s1698_s8, %s1009_s9  ;;  %s423_s16 = scalar_lea.vmem [#allocation13], %s1610_s5 }
  0x65   : > { %667 = vmatpush.bf16.msra.mxu2 %v1035_v59  ;;  %v1031_v4 = vld [vmem:[#allocation7 + $0x18] sm:$0xff]  ;;  %v1030_v6 = vld [vmem:[#allocation7 + $0x10] sm:$0xff]  ;;  %v1028_v11 = vld [vmem:[#allocation7] sm:$0xff]  ;;  %s758_s17 = sshll.u32 %s423_s16, 4  ;;  %s760_s20 = sshll.u32 %s756_s18, 4  ;;  %s759_s17 = int_to_ptr.vmem [resolvable:$true] %s758_s17  ;;  %s761_s20 = int_to_ptr.hbm [resolvable:$true] %s760_s20 }
  0x66   : > { %v592_v24 = vld [vmem:[%s1697_s7] sm:$0x3]  ;;  %s746_s12 = scalar_lea.sflag [#allocation4], %s1607_s4  ;;  %s1342_s2 = sshra.s32 %s761_s20, 4  ;;  %s1343_s2 = int_to_ptr.hbm [resolvable:$true] %s1342_s2 }
  0x67   : > { %526 = vmatpush.bf16.msra.mxu0 %v946_v22  ;;  %v584_v22 = vld [vmem:[%s1696_s6] sm:$0x3]  ;;  %v594_v32 = vperm.slane %v592_v24, 0  ;;  %v595_v33 = vperm.slane %v592_v24, 1  ;;  %s1344_s25 = scalar_lea.hbm %s1343_s2, 8  ;;  %p1349_p7 = scmp.lt.s32.totalorder %s1343_s2, %s1698_s8 }
  0x68   : > { %539 = vmatpush.bf16.msra.mxu1 %v950_v23  ;;  %v586_v27 = vperm.slane %v584_v22, 0  ;;  %v424_v36 = vld [vmem:[%s355_s22] sm:$0xff]  ;;  %p1345_p1 = scmp.ne.s32.totalorder %s1343_s2, %s1344_s25  ;;  %s1348_s22 = scalar_lea.hbm %s1698_s8, 16 }
  0x69   : > { %668 = vmatpush.bf16.msra.mxu2 %v1034_v62  ;;  %p1350_p9 = scmp.lt.s32.totalorder %s1348_s22, %s1344_s25 }
  0x6a   : > { %v1137_v60 = vpop.eup %1136  ;;  %p1346_p3 = pnand %p1345_p1, %p1554_p4 }
  0x6b   : > { %527 = vmatpush.bf16.msra.mxu0 %v938_v28  ;;  %v553_v61 = vmul.f32 256.0, %v1137_v60  ;;  %vm557_vm0 = vweird.f32 %v1137_v60  ;;  %v587_v28 = vperm.slane %v584_v22, 1  ;;  %p1351_p8 = por %p1350_p9, %p1349_p7 }
  0x6c   : > { %540 = vmatpush.bf16.msra.mxu1 %v942_v29  ;;  %p1347_p12 = pneg %p1346_p3 }
  0x6d   : > { %v554_v63 = vsub.f32 1.0, %v553_v61  ;;  %669 = vmatpush.bf16.msra.mxu2 %v1033_v0 }
  0x6e   : > { %p1352_p10 = pnand %p1351_p8, %p1347_p12 }
  0x6f   : > { %528 = vmatpush.bf16.msra.mxu0 %v930_v34  ;;  %v555_v1 = vmul.f32 %v1137_v60, %v554_v63 }
  0x70   : > { %541 = vmatpush.bf16.msra.mxu1 %v934_v35 }
  0x71   : > { %670 = vmatpush.bf16.msra.mxu2 %v1032_v2  ;;  %v556_v3 = vadd.f32 %v1137_v60, %v555_v1 }
  0x73   : > { %529 = vmatpush.bf16.msra.mxu0 %v922_v40  ;;  %v558_v7 = vsel %vm557_vm0, %v1137_v60, %v556_v3 }
  0x74   : > { %542 = vmatpush.bf16.msra.mxu1 %v926_v41 }
  0x75   : > { %671 = vmatpush.bf16.msra.mxu2 %v1031_v4  ;;  %v1134_v4 = vld [vmem:[#allocation10] ss:$0 sm:$0xff] }
  0x77   : > { %530 = vmatpush.bf16.msra.mxu0 %v914_v46 }
  0x78   : > { %543 = vmatpush.bf16.msra.mxu1 %v918_v48 }
  0x79   : > { %672 = vmatpush.bf16.msra.mxu2 %v1030_v6  ;;  %v1135_v6 = vld [vmem:[#allocation11] ss:$0 sm:$0xff] }
  0x7a   : > { %531 = vmatmul.bf16.vlgmr.msra.gmra.mxu0 %v426_v49 }
  0x7b   : > { %544 = vmatmul.bf16.vlgmr.msra.gmra.mxu1 %v426_v49 }
  0x7d   : > { %673 = vmatpush.bf16.msra.mxu2 %v1029_v8 }
  0x81   : > { %674 = vmatpush.bf16.msra.mxu2 %v1028_v11 }
  0xf7   : > { %v532_v50 = vpop.f32.mrf.mxu0 }
  0xf8   : > { %v545_v51 = vpop.f32.mrf.mxu1  ;;  %v560_v53 = vmul.f32 %v532_v50, %v532_v50 }
  0xf9   : > { %v549_v52 = vadd.f32 %v545_v51, %v532_v50  ;;  %v561_v54 = vmul.f32 %v545_v51, %v545_v51 }
  0xfb   : > { %550 = vadd.xlane.f32.xlu0 %v549_v52  ;;  %v562_v57 = vadd.f32 %v561_v54, %v560_v53 }
  0xff   : > { %v534_v55 = vpop.f32.mrf.mxu0 }
 0x100   : > { %v547_v56 = vpop.f32.mrf.mxu1 }
 0x103   : > { %563 = vadd.xlane.f32.xlu0 %v562_v57 }
 0x16e   : > { %v551_v5 = vpop.xlane.xlu0 %550 }
 0x16f   : > { %v559_v9 = vmul.f32 %v558_v7, %v551_v5 }
 0x171   : > { %v566_v12 = vmul.f32 %v559_v9, %v559_v9  ;;  %v569_v25 = vsub.f32 %v532_v50, %v559_v9  ;;  %v570_v26 = vsub.f32 %v545_v51, %v559_v9 }
 0x176   : > { %v564_v10 = vpop.xlane.xlu0 %563 }
 0x177   : > { %v565_v13 = vmul.f32 %v564_v10, %v558_v7 }
 0x179   : > { %v567_v14 = vsub.f32 %v565_v13, %v566_v12 }
 0x17b   : > { %v568_v15 = vmax.f32 %v567_v14, 0.0 }
 0x17d   : > { %v571_v16 = vadd.f32 1e-05, %v568_v15 }
 0x17f   : > { %1138 = vrsqrt.f32 %v571_v16  ;;  %vm578_vm2 = vweird.f32 %v571_v16 }
 0x180   : > { %1140 = vrcp.f32 %v1421_v45 }
 0x185   : > { %v1139_v17 = vpop.eup %1138 }
 0x186   : > { %v573_v18 = vmul.f32 %v1139_v17, %v571_v16  ;;  %vm579_vm1 = vweird.f32 %v1139_v17  ;;  %v1141_v46 = vpop.eup %1140 }
 0x187   : > { %vm580_vm3 = vmor %vm578_vm2, %vm579_vm1  ;;  %v683_v48 = vmul.f32 128.0, %v1141_v46  ;;  %vm687_vm4 = vweird.f32 %v1141_v46 }
 0x188   : > { %v574_v19 = vmul.f32 %v1139_v17, %v573_v18 }
 0x189   : > { %v684_v49 = vsub.f32 1.0, %v683_v48 }
 0x18a   : > { %v575_v20 = vmul.f32 0.5, %v574_v19 }
 0x18b   : > { %v685_v50 = vmul.f32 %v1141_v46, %v684_v49 }
 0x18c   : > { %v576_v21 = vsub.f32 1.5, %v575_v20 }
 0x18d   : > { %v686_v51 = vadd.f32 %v1141_v46, %v685_v50 }
 0x18e   : > { %v577_v23 = vmul.f32 %v1139_v17, %v576_v21 }
 0x18f   : > { %v688_v53 = vsel %vm687_vm4, %v1141_v46, %v686_v51 }
 0x190   : > { %v581_v29 = vsel %vm580_vm3, %v1139_v17, %v577_v23 }
 0x191   : > { %v582_v30 = vmul.f32 %v581_v29, %v569_v25  ;;  %v583_v31 = vmul.f32 %v581_v29, %v570_v26 }
 0x193   : > { %v590_v34 = vmul.f32 %v586_v27, %v582_v30  ;;  %v591_v35 = vmul.f32 %v587_v28, %v583_v31 }
 0x195   : > { %v598_v37 = vadd.f32 %v594_v32, %v590_v34  ;;  %v599_v38 = vadd.f32 %v595_v33, %v591_v35 }
 0x197   : > { %v600_v39 = vadd.f32 %v598_v37, %v424_v36 }
 0x199   : > { %v1650_v40 = vmax.f32 %v600_v39, 0.0 }
 0x19b   : > { %v602_v41 = vpack.c.bf16 %v1650_v40, %v1650_v40 }
 0x19d   : > { %675 = vmatmul.bf16.vlgmr.msra.gmra.mxu2 %v602_v41 }
 0x220   : > { %v676_v42 = vpop.f32.mrf.mxu2 }
 0x221   : > { %680 = vadd.xlane.f32.xlu1 %v676_v42  ;;  %v690_v43 = vmul.f32 %v676_v42, %v676_v42 }
 0x228   : > { %v678_v44 = vpop.f32.mrf.mxu2 }
 0x229   : > { %691 = vadd.xlane.f32.xlu1 %v690_v43 }
 0x294   : > { %v681_v52 = vpop.xlane.xlu1 %680 }
 0x295   : > { %v689_v54 = vmul.f32 %v688_v53, %v681_v52 }
 0x297   : > { %v694_v56 = vmul.f32 %v689_v54, %v689_v54  ;;  %v697_v3 = vsub.f32 %v676_v42, %v689_v54 }
 0x29c   : > { %v692_v55 = vpop.xlane.xlu1 %691 }
 0x29d   : > { %v693_v57 = vmul.f32 %v692_v55, %v688_v53 }
 0x29f   : > { %v695_v58 = vsub.f32 %v693_v57, %v694_v56 }
 0x2a1   : > { %v696_v59 = vmax.f32 %v695_v58, 0.0 }
 0x2a3   : > { %v698_v60 = vadd.f32 1e-05, %v696_v59 }
 0x2a5   : > { %1142 = vrsqrt.f32 %v698_v60  ;;  %vm705_vm6 = vweird.f32 %v698_v60 }
 0x2ab   : > { %v1143_v61 = vpop.eup %1142 }
 0x2ac   : > { %v700_v62 = vmul.f32 %v1143_v61, %v698_v60  ;;  %vm706_vm5 = vweird.f32 %v1143_v61 }
 0x2ad   : > { %vm707_vm7 = vmor %vm705_vm6, %vm706_vm5 }
 0x2ae   : > { %v701_v63 = vmul.f32 %v1143_v61, %v700_v62 }
 0x2b0   : > { %v702_v0 = vmul.f32 0.5, %v701_v63 }
 0x2b2   : > { %v703_v1 = vsub.f32 1.5, %v702_v0 }
 0x2b4   : > { %v704_v2 = vmul.f32 %v1143_v61, %v703_v1 }
 0x2b6   : > { %v708_v5 = vsel %vm707_vm7, %v1143_v61, %v704_v2 }
 0x2b7   : > { %v709_v7 = vmul.f32 %v708_v5, %v697_v3 }
 0x2b9   : > { %v714_v8 = vmul.f32 %v1134_v4, %v709_v7 }
 0x2bb   : > { %v719_v9 = vadd.f32 %v1135_v6, %v714_v8 }
 0x2bd   : > { %v720_v10 = vadd.f32 %v719_v9, %v599_v38 }
 0x2bf   : > { %v1007_v11 = vmul.f32 -1.442695, %v720_v10 }
 0x2c1   : > { %1144 = vpow2.f32 %v1007_v11 }
 0x2c7   : > { %v1145_v12 = vpop.eup %1144 }
 0x2c8   : > { %v724_v13 = vadd.f32 1.0, %v1145_v12 }
 0x2ca   : > { %1146 = vrcp.f32 %v724_v13  ;;  %v736_v17 = vand.u32 2147483648, %v724_v13  ;;  %v734_v19 = vand.u32 2147483647, %v724_v13  ;;  %vm730_vm9 = vweird.f32 %v724_v13 }
 0x2cc   : > { %v737_v21 = vor.u32 1.1754944e-38, %v736_v17  ;;  %vm735_vm11 = vcmp.eq.f32.partialorder %v734_v19, 8.507059e+37 }
 0x2d0   : > { %v1147_v14 = vpop.eup %1146 }
 0x2d1   : > { %v726_v15 = vmul.f32 %v1147_v14, %v724_v13  ;;  %vm731_vm8 = vweird.f32 %v1147_v14 }
 0x2d2   : > { %vm732_vm10 = vmor %vm730_vm9, %vm731_vm8 }
 0x2d3   : > { %v727_v16 = vsub.f32 1.0, %v726_v15 }
 0x2d5   : > { %v728_v18 = vmul.f32 %v1147_v14, %v727_v16 }
 0x2d7   : > { %v729_v20 = vadd.f32 %v1147_v14, %v728_v18 }
 0x2d9   : > { %v733_v22 = vsel %vm732_vm10, %v1147_v14, %v729_v20 }
 0x2da   : > { %v738_v23 = vsel %vm735_vm11, %v737_v21, %v733_v22 }
 0x2db   : > { %v740_v24 = vsub.f32 1.0, %v738_v23  ;;  %v742_v26 = vmul.f32 %v738_v23, %v1650_v40 }
 0x2dd   : > { %v741_v25 = vmul.f32 %v740_v24, %v1638_v47 }
 0x2df   : > { %v743_v27 = vadd.f32 %v742_v26, %v741_v25 }
 0x2e1   : > { %744 = vst [vmem:[%s423_s16] sm:$0xff] %v743_v27 }
 0x2e2   : > { %1355 = shalt.err (!%p1352_p10)
}
 0x2e3   : > { %1056 = dma.vmem_to_hbm [thread:$0]  (%p1554_p4), %s759_s17, 128, %s761_s20, %s746_s12  }
 0x2e4 PF: > { %s772_s4 = sand.u32 1, %s1398_s27   ;;  %p1720_p11 = scmp.ge.s32.totalorder %s1410_s30, 2 }
 0x2e5   : > { %s773_s21 = scalar_lea.sflag [#allocation4], %s772_s4 }
 0x2e6   : > { %p1079_p5 = pnand %p1720_p11, %p1558_p6 }
 0x2e8   : > { %p1080_p13 = pneg %p1079_p5 }
 0x2ea   : > { %1393 = dma.done.wait (%p1080_p13), %s773_s21, 128  }
 0x2eb   : > { %1395 = vsyncadd (%p1080_p13), %s773_s21, 4294967168  ;;  %s1721_s30 = sld [smem:[#allocation21_spill]]  ;;  %s1724_s27 = smov %s1402_s28 }
 0x2ec   : > { %s1722_s19 = sld [smem:[#allocation20_spill]] }
 0x2ed   : > { %s1723_s29 = sld [smem:[#allocation22_spill]] }
 0x2f1   : > { %p26_p0 = scmp.ge.s32.totalorder %s1721_s30, 4  }
 0x2f2   : > { %s1725_s28 = smov %s1722_s19 }
 0x2f3   :  { %28 = sbr.rel (!%p26_p0) target bundleno = 14 (0xe), region = 126 }
 0x2f8   :  { %779 = vsyncpa [#allocation3], 1 }
 0x2f9   :  { %781 = vsyncpa [#allocation3 + $0x1], 1 }
 0x2fa   :  { %782 = vsyncpa [#allocation6], 1 }
 0x2fb   :  { %784 = vsyncpa [#allocation6 + $0x1], 1 }
 0x2fc   :  { %785 = vsyncpa [#allocation9], 1 }
 0x2fd   :  { %786 = vsyncpa [#allocation12], 1 }
 0x2fe   :  { %787 = vsyncpa [#allocation4], 1 }
 0x2ff   :  { %789 = vsyncpa [#allocation4 + $0x1], 1 }

</bundles_post_ra>
